<compile_context>
chip_gen: v7x
topology: tpu7x:2x2x1
jax: 0.10.0
libtpu: 0.0.40
codegen_flags: <defaults>
</compile_context>

<pallas_src>
import functools

import jax
import jax.numpy as jnp
from jax import lax
from jax.experimental import pallas as pl
from jax.experimental.pallas import tpu as pltpu


def _round_up(x, m):
    return (x + m - 1) // m * m


def attention_kernel(x_ref, wqkv_ref, bqkv_ref, wproj_ref, bproj_ref, o_ref,
                     *, n_heads, head_dim, scale, n_kv, q_tile):
    H, hd = n_heads, head_dim
    D = H * hd
    f32 = jnp.float32
    bf16 = jnp.bfloat16

    # Query tile: sliced out of the (bf16) full-sequence block that already
    # feeds the K/V projection -- no duplicated x input / extra HBM read.
    q_start = pl.multiple_of(pl.program_id(1) * q_tile, q_tile)
    xq = x_ref[0, pl.ds(q_start, q_tile), :]              # (tq, D)  bf16
    xkv = x_ref[0]                                        # (Nk, D)  bf16

    w = wqkv_ref[...]                                     # (D, 3D)  bf16
    b = bqkv_ref[...]                                     # (1, 3D)  f32

    # Q/K/V projections: lane-dense 2-D MXU matmuls, bf16 in / f32 accumulate.
    # Softmax scale folded into q: O(tq*D) multiply instead of O(tq*Nk).
    q2d = (jnp.dot(xq, w[:, :D], preferred_element_type=f32) + b[:, :D]) * scale
    kv2d = jnp.dot(xkv, w[:, D:], preferred_element_type=f32) + b[:, D:]
    k2d = kv2d[:, :D]
    v2d = kv2d[:, D:]

    # Head-major (H, n, hd) layout.  Lane slices + a major-axis stack is the
    # relayout Mosaic handles robustly at non-native head widths (a single
    # reshape/einshape pass would trim vst pressure but is less portable).
    def split_heads(a2d):
        return jnp.stack([a2d[:, h * hd:(h + 1) * hd] for h in range(H)], axis=0)

    qh = split_heads(q2d.astype(bf16))                    # (H, tq, hd)
    kh = split_heads(k2d.astype(bf16))                    # (H, Nk, hd)
    vh = split_heads(v2d.astype(bf16))                    # (H, Nk, hd)

    # Scores: one batched MXU contraction over heads; contraction on the last
    # axis of both operands -> no explicit k.T / XLU transpose.
    s = jnp.einsum('hqd,hkd->hqk', qh, kh,
                   preferred_element_type=f32)            # (H, tq, Nk) f32

    if n_kv < s.shape[-1]:  # static: only taken when the token axis was padded
        key_idx = lax.broadcasted_iota(jnp.int32, (1, 1, s.shape[-1]), 2)
        s = jnp.where(key_idx < n_kv, s, -1e30)

    # Softmax stats in f32; p stays unnormalized, the output is normalized.
    m = jnp.max(s, axis=-1, keepdims=True)                # (H, tq, 1)
    p = jnp.exp(s - m)                                    # (H, tq, Nk) f32
    l = jnp.sum(p, axis=-1, keepdims=True)                # (H, tq, 1)
    inv_l = pl.reciprocal(l, approx=True)                 # EUP, not a VPU divide

    # attn @ V: batched over heads; p in bf16 for the MXU, f32 accumulate.
    wa = jnp.einsum('hqk,hkd->hqd', p.astype(bf16), vh,
                    preferred_element_type=f32)           # (H, tq, hd)
    wa = (wa * inv_l).astype(bf16)                        # O(tq*D) normalize

    # Head merge in ONE lane-concat pass, then a single D-deep MXU contraction
    # for the output projection (no per-head hd-deep dots / f32 add chain).
    wa2d = jnp.concatenate([wa[h] for h in range(H)], axis=-1)   # (tq, D) bf16
    out = jnp.dot(wa2d, wproj_ref[...], preferred_element_type=f32) \
        + bproj_ref[...]                                  # (tq, D) f32
    o_ref[0] = out.astype(o_ref.dtype)


def _vmem_limit_bytes():
    cap = None
    try:
        info = pltpu.get_tpu_info()
        for name in ("vmem_capacity_bytes", "vmem_size_bytes", "vmem_bytes"):
            val = getattr(info, name, None)
            if val:
                cap = int(val)
                break
    except Exception:
        cap = None
    if cap is None:
        cap = 64 * 1024 * 1024            # conservative: v7x per-TC VMEM
    return min(cap * 3 // 4, 112 * 1024 * 1024)


def _build_call(B, n_pad, D, q_tile, out_dtype, kernel, vmem_limit,
                single_buffer_weights):
    const_kw = ({"pipeline_mode": pl.Buffered(1)} if single_buffer_weights
                else {})
    return pl.pallas_call(
        kernel,
        out_shape=jax.ShapeDtypeStruct((B, n_pad, D), out_dtype),
        grid=(B, n_pad // q_tile),
        in_specs=[
            # Full-sequence activation block (bf16): resident across query
            # tiles (index_map ignores ti); feeds both K/V and the q slice.
            pl.BlockSpec((1, n_pad, D), lambda bi, ti: (bi, 0, 0)),
            # Constant weight / bias blocks (single-buffered: no 2x VMEM copy).
            pl.BlockSpec((D, 3 * D), lambda bi, ti: (0, 0), **const_kw),
            pl.BlockSpec((1, 3 * D), lambda bi, ti: (0, 0), **const_kw),
            pl.BlockSpec((D, D), lambda bi, ti: (0, 0), **const_kw),
            pl.BlockSpec((1, D), lambda bi, ti: (0, 0), **const_kw),
        ],
        out_specs=pl.BlockSpec((1, q_tile, D), lambda bi, ti: (bi, ti, 0)),
        compiler_params=pltpu.CompilerParams(
            dimension_semantics=("parallel", "parallel"),
            vmem_limit_bytes=vmem_limit),
    )


def attention(x, wqkv_t, bqkv, wproj_t, bproj, *, n_heads, q_tile=None):
    """x: (B, N, D).  Weights pre-transposed to (in, out); biases (1, out)."""
    B, N, D = x.shape
    assert D % n_heads == 0
    hd = D // n_heads
    scale = float(hd) ** -0.5
    out_dtype = x.dtype

    vmem_limit = _vmem_limit_bytes()

    # Query-tile size: keep the live softmax footprint (~10 B * H * tq * N:
    # scores f32 + probs f32 + probs bf16) to ~1/3 of the VMEM budget so the
    # weights, the resident x block and the projected K/V fit alongside.
    # 128 MiB parts (v5e/v6e) therefore get bigger tiles / fewer grid steps
    # than v7x (64 MiB) automatically.
    if q_tile is None:
        per_row = 10 * n_heads * max(N, 1)
        q_tile = max(8, min(512, (vmem_limit // 3) // per_row))
    q_tile = _round_up(min(q_tile, N), 8)
    n_pad = _round_up(N, q_tile)

    # bf16 activations + weights for the MXU (f32 accumulation in-kernel);
    # biases stay f32.
    x_bf = x.astype(jnp.bfloat16)
    if n_pad != N:
        x_bf = jnp.pad(x_bf, ((0, 0), (0, n_pad - N), (0, 0)))
    wqkv_bf = wqkv_t.astype(jnp.bfloat16)
    wproj_bf = wproj_t.astype(jnp.bfloat16)

    kernel = functools.partial(attention_kernel, n_heads=n_heads, head_dim=hd,
                               scale=scale, n_kv=N, q_tile=q_tile)
    args = (x_bf, wqkv_bf, bqkv, wproj_bf, bproj)

    try:
        out = _build_call(B, n_pad, D, q_tile, out_dtype, kernel, vmem_limit,
                          single_buffer_weights=True)(*args)
    except Exception:
        # Single-buffering the constant weight blocks is a pure VMEM saving;
        # fall back to the default double-buffered pipeline if this jax
        # version rejects pipeline_mode=pl.Buffered(1).
        out = _build_call(B, n_pad, D, q_tile, out_dtype, kernel, vmem_limit,
                          single_buffer_weights=False)(*args)

    if n_pad != N:
        out = out[:, :N, :]
    return out


def attention_ref(x, wqkv_t, bqkv, wproj_t, bproj, *, n_heads):
    """Pure-JAX f32 reference mirroring the PyTorch forward."""
    B, N, D = x.shape
    hd = D // n_heads
    scale = hd ** (-0.5)
    qkv = x @ wqkv_t + bqkv[0]                              # (B, N, 3D)
    qkv = qkv.reshape(B, N, 3, n_heads, hd).transpose(2, 0, 3, 1, 4)
    q, k, v = qkv[0], qkv[1], qkv[2]                        # (B, H, N, hd)
    dp = jnp.einsum("bhnd,bhmd->bhnm", q, k) * scale
    attn = jax.nn.softmax(dp, axis=-1)
    wa = jnp.einsum("bhnm,bhmd->bhnd", attn, v)             # (B, H, N, hd)
    wa = wa.transpose(0, 2, 1, 3).reshape(B, N, D)
    return wa @ wproj_t + bproj[0]


if __name__ == "__main__":
    B, N, DIM, N_HEADS = 2, 16, 32, 4

    key = jax.random.PRNGKey(0)
    kx, k1, k2, k3, k4 = jax.random.split(key, 5)

    x = jax.random.normal(kx, (B, N, DIM), dtype=jnp.float32)
    # PyTorch Linear weights are (out, in); store pre-transposed (in, out).
    wqkv_t = jax.random.normal(k1, (DIM, 3 * DIM), dtype=jnp.float32) * 0.1
    bqkv = jax.random.normal(k2, (1, 3 * DIM), dtype=jnp.float32) * 0.1
    wproj_t = jax.random.normal(k3, (DIM, DIM), dtype=jnp.float32) * 0.1
    bproj = jax.random.normal(k4, (1, DIM), dtype=jnp.float32) * 0.1

    ref = attention_ref(x, wqkv_t, bqkv, wproj_t, bproj, n_heads=N_HEADS)

    # q_tile=8 exercises the (batch, query-tile) grid and the in-kernel query
    # slicing: grid = (2, 2).
    out_tiled = attention(x, wqkv_t, bqkv, wproj_t, bproj,
                          n_heads=N_HEADS, q_tile=8)
    out_tiled = jax.block_until_ready(out_tiled)
    assert out_tiled.shape == (B, N, DIM)
    # bf16 MXU inputs -> looser tolerance than the pure-f32 reference.
    assert jnp.allclose(out_tiled, ref, atol=2e-2, rtol=5e-2), "tiled mismatch"

    # Default path exercises the generation-aware q_tile / VMEM heuristic
    # (single query tile per sample at this size).
    out_auto = attention(x, wqkv_t, bqkv, wproj_t, bproj, n_heads=N_HEADS)
    out_auto = jax.block_until_ready(out_auto)
    assert jnp.allclose(out_auto, ref, atol=2e-2, rtol=5e-2), "auto mismatch"

    print("KERNEL_OK")
</pallas_src>

<mosaic_0001>
module attributes {stable_mosaic.version = 11 : i64} {
  func.func @attention_kernel(%arg0: i32, %arg1: i32, %arg2: memref<1x16x32xbf16, #tpu.memory_space<vmem>>, %arg3: memref<32x96xbf16, #tpu.memory_space<vmem>>, %arg4: memref<1x96xf32, #tpu.memory_space<vmem>>, %arg5: memref<32x32xbf16, #tpu.memory_space<vmem>>, %arg6: memref<1x32xf32, #tpu.memory_space<vmem>>, %arg7: memref<1x8x32xf32, #tpu.memory_space<vmem>>) attributes {dimension_semantics = [#tpu.dimension_semantics<parallel>, #tpu.dimension_semantics<parallel>], iteration_bounds = array<i64: 2, 2>, scalar_prefetch = 0 : i64, scratch_operands = 0 : i64, tpu.core_type = #tpu.core_type<tc>, window_params = [{transform_indices = @transform_0, window_bounds = array<i64: 1, 16, 32>}, {pipeline_mode = #tpu.pipeline_mode<synchronous>, transform_indices = @transform_1, window_bounds = array<i64: 32, 96>}, {pipeline_mode = #tpu.pipeline_mode<synchronous>, transform_indices = @transform_2, window_bounds = array<i64: 1, 96>}, {pipeline_mode = #tpu.pipeline_mode<synchronous>, transform_indices = @transform_3, window_bounds = array<i64: 32, 32>}, {pipeline_mode = #tpu.pipeline_mode<synchronous>, transform_indices = @transform_4, window_bounds = array<i64: 1, 32>}, {transform_indices = @transform_5, window_bounds = array<i64: 1, 8, 32>}]} {
    %c8_i32 = arith.constant 8 : i32
    %0 = arith.muli %arg1, %c8_i32 : i32
    %1 = tpu.assume_multiple %0, 8 : i32
    %c0 = arith.constant 0 : index
    %2 = arith.index_cast %1 : i32 to index
    %c0_0 = arith.constant 0 : index
    %3 = vector.load %arg2[%c0, %2, %c0_0] : memref<1x16x32xbf16, #tpu.memory_space<vmem>>, vector<1x8x32xbf16>
    %4 = vector.shape_cast %3 : vector<1x8x32xbf16> to vector<8x32xbf16>
    %c0_1 = arith.constant 0 : index
    %c0_2 = arith.constant 0 : index
    %c0_3 = arith.constant 0 : index
    %5 = vector.load %arg2[%c0_1, %c0_2, %c0_3] : memref<1x16x32xbf16, #tpu.memory_space<vmem>>, vector<1x16x32xbf16>
    %6 = vector.shape_cast %5 : vector<1x16x32xbf16> to vector<16x32xbf16>
    %c0_4 = arith.constant 0 : index
    %c0_5 = arith.constant 0 : index
    %7 = vector.load %arg3[%c0_4, %c0_5] : memref<32x96xbf16, #tpu.memory_space<vmem>>, vector<32x96xbf16>
    %c0_6 = arith.constant 0 : index
    %c0_7 = arith.constant 0 : index
    %8 = vector.load %arg4[%c0_6, %c0_7] : memref<1x96xf32, #tpu.memory_space<vmem>>, vector<1x96xf32>
    %9 = vector.extract_strided_slice %7 {offsets = [0, 0], sizes = [32, 32], strides = [1, 1]} : vector<32x96xbf16> to vector<32x32xbf16>
    %cst = arith.constant dense<0.000000e+00> : vector<8x32xf32>
    %10 = tpu.matmul %4, %9, %cst {dimension_numbers = #tpu.dot_dimension_numbers<[1], [0], [0], [1], [0, 0, 1, 1], [], []>} : vector<8x32xbf16>, vector<32x32xbf16>, vector<8x32xf32> -> vector<8x32xf32>
    %11 = vector.extract_strided_slice %8 {offsets = [0, 0], sizes = [1, 32], strides = [1, 1]} : vector<1x96xf32> to vector<1x32xf32>
    %12 = vector.broadcast %11 : vector<1x32xf32> to vector<8x32xf32>
    %13 = arith.addf %10, %12 : vector<8x32xf32>
    %cst_8 = arith.constant 0.353553385 : f32
    %14 = vector.broadcast %cst_8 : f32 to vector<8x32xf32>
    %15 = arith.mulf %13, %14 : vector<8x32xf32>
    %16 = vector.extract_strided_slice %7 {offsets = [0, 32], sizes = [32, 64], strides = [1, 1]} : vector<32x96xbf16> to vector<32x64xbf16>
    %cst_9 = arith.constant dense<0.000000e+00> : vector<16x64xf32>
    %17 = tpu.matmul %6, %16, %cst_9 {dimension_numbers = #tpu.dot_dimension_numbers<[1], [0], [0], [1], [0, 0, 1, 1], [], []>} : vector<16x32xbf16>, vector<32x64xbf16>, vector<16x64xf32> -> vector<16x64xf32>
    %18 = vector.extract_strided_slice %8 {offsets = [0, 32], sizes = [1, 64], strides = [1, 1]} : vector<1x96xf32> to vector<1x64xf32>
    %19 = vector.broadcast %18 : vector<1x64xf32> to vector<16x64xf32>
    %20 = arith.addf %17, %19 : vector<16x64xf32>
    %21 = vector.extract_strided_slice %20 {offsets = [0, 0], sizes = [16, 32], strides = [1, 1]} : vector<16x64xf32> to vector<16x32xf32>
    %22 = vector.extract_strided_slice %20 {offsets = [0, 32], sizes = [16, 32], strides = [1, 1]} : vector<16x64xf32> to vector<16x32xf32>
    %23 = arith.truncf %15 : vector<8x32xf32> to vector<8x32xbf16>
    %24 = vector.extract_strided_slice %23 {offsets = [0, 0], sizes = [8, 8], strides = [1, 1]} : vector<8x32xbf16> to vector<8x8xbf16>
    %25 = vector.extract_strided_slice %23 {offsets = [0, 8], sizes = [8, 8], strides = [1, 1]} : vector<8x32xbf16> to vector<8x8xbf16>
    %26 = vector.extract_strided_slice %23 {offsets = [0, 16], sizes = [8, 8], strides = [1, 1]} : vector<8x32xbf16> to vector<8x8xbf16>
    %27 = vector.extract_strided_slice %23 {offsets = [0, 24], sizes = [8, 8], strides = [1, 1]} : vector<8x32xbf16> to vector<8x8xbf16>
    %28 = vector.shape_cast %24 : vector<8x8xbf16> to vector<1x8x8xbf16>
    %29 = vector.shape_cast %25 : vector<8x8xbf16> to vector<1x8x8xbf16>
    %30 = vector.shape_cast %26 : vector<8x8xbf16> to vector<1x8x8xbf16>
    %31 = vector.shape_cast %27 : vector<8x8xbf16> to vector<1x8x8xbf16>
    %32 = tpu.concatenate %28, %29, %30, %31 in 0 : vector<1x8x8xbf16>, vector<1x8x8xbf16>, vector<1x8x8xbf16>, vector<1x8x8xbf16> -> vector<4x8x8xbf16>
    %33 = arith.truncf %21 : vector<16x32xf32> to vector<16x32xbf16>
    %34 = vector.extract_strided_slice %33 {offsets = [0, 0], sizes = [16, 8], strides = [1, 1]} : vector<16x32xbf16> to vector<16x8xbf16>
    %35 = vector.extract_strided_slice %33 {offsets = [0, 8], sizes = [16, 8], strides = [1, 1]} : vector<16x32xbf16> to vector<16x8xbf16>
    %36 = vector.extract_strided_slice %33 {offsets = [0, 16], sizes = [16, 8], strides = [1, 1]} : vector<16x32xbf16> to vector<16x8xbf16>
    %37 = vector.extract_strided_slice %33 {offsets = [0, 24], sizes = [16, 8], strides = [1, 1]} : vector<16x32xbf16> to vector<16x8xbf16>
    %38 = vector.shape_cast %34 : vector<16x8xbf16> to vector<1x16x8xbf16>
    %39 = vector.shape_cast %35 : vector<16x8xbf16> to vector<1x16x8xbf16>
    %40 = vector.shape_cast %36 : vector<16x8xbf16> to vector<1x16x8xbf16>
    %41 = vector.shape_cast %37 : vector<16x8xbf16> to vector<1x16x8xbf16>
    %42 = tpu.concatenate %38, %39, %40, %41 in 0 : vector<1x16x8xbf16>, vector<1x16x8xbf16>, vector<1x16x8xbf16>, vector<1x16x8xbf16> -> vector<4x16x8xbf16>
    %43 = arith.truncf %22 : vector<16x32xf32> to vector<16x32xbf16>
    %44 = vector.extract_strided_slice %43 {offsets = [0, 0], sizes = [16, 8], strides = [1, 1]} : vector<16x32xbf16> to vector<16x8xbf16>
    %45 = vector.extract_strided_slice %43 {offsets = [0, 8], sizes = [16, 8], strides = [1, 1]} : vector<16x32xbf16> to vector<16x8xbf16>
    %46 = vector.extract_strided_slice %43 {offsets = [0, 16], sizes = [16, 8], strides = [1, 1]} : vector<16x32xbf16> to vector<16x8xbf16>
    %47 = vector.extract_strided_slice %43 {offsets = [0, 24], sizes = [16, 8], strides = [1, 1]} : vector<16x32xbf16> to vector<16x8xbf16>
    %48 = vector.shape_cast %44 : vector<16x8xbf16> to vector<1x16x8xbf16>
    %49 = vector.shape_cast %45 : vector<16x8xbf16> to vector<1x16x8xbf16>
    %50 = vector.shape_cast %46 : vector<16x8xbf16> to vector<1x16x8xbf16>
    %51 = vector.shape_cast %47 : vector<16x8xbf16> to vector<1x16x8xbf16>
    %52 = tpu.concatenate %48, %49, %50, %51 in 0 : vector<1x16x8xbf16>, vector<1x16x8xbf16>, vector<1x16x8xbf16>, vector<1x16x8xbf16> -> vector<4x16x8xbf16>
    "tpu.trace_start"() <{level = 10 : i32, message = "hqd,hkd->hqk"}> : () -> ()
    %cst_10 = arith.constant dense<0.000000e+00> : vector<4x8x16xf32>
    %53 = tpu.matmul %32, %42, %cst_10 {dimension_numbers = #tpu.dot_dimension_numbers<[2], [2], [1], [1], [0, 0, 0, 1, 1, 1], [0], [0]>} : vector<4x8x8xbf16>, vector<4x16x8xbf16>, vector<4x8x16xf32> -> vector<4x8x16xf32>
    "tpu.trace_stop"() : () -> ()
    %cst_11 = arith.constant dense<0xFF800000> : vector<4x8xf32>
    %54 = vector.multi_reduction <maximumf>, %53, %cst_11 [2] : vector<4x8x16xf32> to vector<4x8xf32>
    %55 = vector.shape_cast %54 : vector<4x8xf32> to vector<4x8x1xf32>
    %56 = vector.broadcast %55 : vector<4x8x1xf32> to vector<4x8x16xf32>
    %57 = arith.subf %53, %56 : vector<4x8x16xf32>
    %58 = math.exp %57 : vector<4x8x16xf32>
    %cst_12 = arith.constant dense<0.000000e+00> : vector<4x8xf32>
    %59 = vector.multi_reduction <add>, %58, %cst_12 [2] : vector<4x8x16xf32> to vector<4x8xf32>
    %60 = vector.shape_cast %59 : vector<4x8xf32> to vector<4x8x1xf32>
    %61 = tpu.reciprocal %60 {approx = true} : vector<4x8x1xf32> -> vector<4x8x1xf32>
    %62 = arith.truncf %58 : vector<4x8x16xf32> to vector<4x8x16xbf16>
    "tpu.trace_start"() <{level = 10 : i32, message = "hqk,hkd->hqd"}> : () -> ()
    %cst_13 = arith.constant dense<0.000000e+00> : vector<4x8x8xf32>
    %63 = tpu.matmul %62, %52, %cst_13 {dimension_numbers = #tpu.dot_dimension_numbers<[2], [1], [1], [2], [0, 0, 0, 1, 1, 2], [0], [0]>} : vector<4x8x16xbf16>, vector<4x16x8xbf16>, vector<4x8x8xf32> -> vector<4x8x8xf32>
    "tpu.trace_stop"() : () -> ()
    %64 = vector.broadcast %61 : vector<4x8x1xf32> to vector<4x8x8xf32>
    %65 = arith.mulf %63, %64 : vector<4x8x8xf32>
    %66 = arith.truncf %65 : vector<4x8x8xf32> to vector<4x8x8xbf16>
    %67 = vector.extract_strided_slice %66 {offsets = [0, 0, 0], sizes = [1, 8, 8], strides = [1, 1, 1]} : vector<4x8x8xbf16> to vector<1x8x8xbf16>
    %68 = vector.shape_cast %67 : vector<1x8x8xbf16> to vector<8x8xbf16>
    %69 = vector.extract_strided_slice %66 {offsets = [1, 0, 0], sizes = [1, 8, 8], strides = [1, 1, 1]} : vector<4x8x8xbf16> to vector<1x8x8xbf16>
    %70 = vector.shape_cast %69 : vector<1x8x8xbf16> to vector<8x8xbf16>
    %71 = vector.extract_strided_slice %66 {offsets = [2, 0, 0], sizes = [1, 8, 8], strides = [1, 1, 1]} : vector<4x8x8xbf16> to vector<1x8x8xbf16>
    %72 = vector.shape_cast %71 : vector<1x8x8xbf16> to vector<8x8xbf16>
    %73 = vector.extract_strided_slice %66 {offsets = [3, 0, 0], sizes = [1, 8, 8], strides = [1, 1, 1]} : vector<4x8x8xbf16> to vector<1x8x8xbf16>
    %74 = vector.shape_cast %73 : vector<1x8x8xbf16> to vector<8x8xbf16>
    %75 = tpu.concatenate %68, %70, %72, %74 in 1 : vector<8x8xbf16>, vector<8x8xbf16>, vector<8x8xbf16>, vector<8x8xbf16> -> vector<8x32xbf16>
    %c0_14 = arith.constant 0 : index
    %c0_15 = arith.constant 0 : index
    %76 = vector.load %arg5[%c0_14, %c0_15] : memref<32x32xbf16, #tpu.memory_space<vmem>>, vector<32x32xbf16>
    %cst_16 = arith.constant dense<0.000000e+00> : vector<8x32xf32>
    %77 = tpu.matmul %75, %76, %cst_16 {dimension_numbers = #tpu.dot_dimension_numbers<[1], [0], [0], [1], [0, 0, 1, 1], [], []>} : vector<8x32xbf16>, vector<32x32xbf16>, vector<8x32xf32> -> vector<8x32xf32>
    %c0_17 = arith.constant 0 : index
    %c0_18 = arith.constant 0 : index
    %78 = vector.load %arg6[%c0_17, %c0_18] : memref<1x32xf32, #tpu.memory_space<vmem>>, vector<1x32xf32>
    %79 = vector.broadcast %78 : vector<1x32xf32> to vector<8x32xf32>
    %80 = arith.addf %77, %79 : vector<8x32xf32>
    %c0_19 = arith.constant 0 : index
    %c0_20 = arith.constant 0 : index
    %c0_21 = arith.constant 0 : index
    %81 = vector.load %arg7[%c0_19, %c0_20, %c0_21] : memref<1x8x32xf32, #tpu.memory_space<vmem>>, vector<1x8x32xf32>
    %82 = vector.shape_cast %81 : vector<1x8x32xf32> to vector<8x32xf32>
    %83 = vector.shape_cast %80 : vector<8x32xf32> to vector<1x8x32xf32>
    tpu.vector_store %arg7[%c0_19, %c0_20, %c0_21], %83 {strides = array<i32>} : memref<1x8x32xf32, #tpu.memory_space<vmem>>, vector<1x8x32xf32>,
    return
  }
  func.func @transform_0(%arg0: i32, %arg1: i32) -> (i32, i32, i32) {
    %c0_i32 = arith.constant 0 : i32
    %c0_i32_0 = arith.constant 0 : i32
    %c0_i32_1 = arith.constant 0 : i32
    return %arg0, %c0_i32, %c0_i32_0 : i32, i32, i32
  }
  func.func @transform_1(%arg0: i32, %arg1: i32) -> (i32, i32) {
    %c0_i32 = arith.constant 0 : i32
    %c0_i32_0 = arith.constant 0 : i32
    %c0_i32_1 = arith.constant 0 : i32
    return %c0_i32, %c0_i32_0 : i32, i32
  }
  func.func @transform_2(%arg0: i32, %arg1: i32) -> (i32, i32) {
    %c0_i32 = arith.constant 0 : i32
    %c0_i32_0 = arith.constant 0 : i32
    %c0_i32_1 = arith.constant 0 : i32
    return %c0_i32, %c0_i32_0 : i32, i32
  }
  func.func @transform_3(%arg0: i32, %arg1: i32) -> (i32, i32) {
    %c0_i32 = arith.constant 0 : i32
    %c0_i32_0 = arith.constant 0 : i32
    %c0_i32_1 = arith.constant 0 : i32
    return %c0_i32, %c0_i32_0 : i32, i32
  }
  func.func @transform_4(%arg0: i32, %arg1: i32) -> (i32, i32) {
    %c0_i32 = arith.constant 0 : i32
    %c0_i32_0 = arith.constant 0 : i32
    %c0_i32_1 = arith.constant 0 : i32
    return %c0_i32, %c0_i32_0 : i32, i32
  }
  func.func @transform_5(%arg0: i32, %arg1: i32) -> (i32, i32, i32) {
    %c0_i32 = arith.constant 0 : i32
    %c0_i32_0 = arith.constant 0 : i32
    return %arg0, %arg1, %c0_i32 : i32, i32, i32
  }
}

module attributes {stable_mosaic.version = 11 : i64} {
  func.func @attention_kernel(%arg0: i32, %arg1: i32, %arg2: memref<1x16x32xbf16, #tpu.memory_space<vmem>>, %arg3: memref<32x96xbf16, #tpu.memory_space<vmem>>, %arg4: memref<1x96xf32, #tpu.memory_space<vmem>>, %arg5: memref<32x32xbf16, #tpu.memory_space<vmem>>, %arg6: memref<1x32xf32, #tpu.memory_space<vmem>>, %arg7: memref<1x8x32xf32, #tpu.memory_space<vmem>>) attributes {dimension_semantics = [#tpu.dimension_semantics<parallel>, #tpu.dimension_semantics<parallel>], iteration_bounds = array<i64: 2, 2>, scalar_prefetch = 0 : i64, scratch_operands = 0 : i64, tpu.core_type = #tpu.core_type<tc>, window_params = [{transform_indices = @transform_0, window_bounds = array<i64: 1, 16, 32>}, {pipeline_mode = #tpu.pipeline_mode<synchronous>, transform_indices = @transform_1, window_bounds = array<i64: 32, 96>}, {pipeline_mode = #tpu.pipeline_mode<synchronous>, transform_indices = @transform_2, window_bounds = array<i64: 1, 96>}, {pipeline_mode = #tpu.pipeline_mode<synchronous>, transform_indices = @transform_3, window_bounds = array<i64: 32, 32>}, {pipeline_mode = #tpu.pipeline_mode<synchronous>, transform_indices = @transform_4, window_bounds = array<i64: 1, 32>}, {transform_indices = @transform_5, window_bounds = array<i64: 1, 8, 32>}]} {
    %c8_i32 = arith.constant 8 : i32
    %0 = arith.muli %arg1, %c8_i32 : i32
    %1 = tpu.assume_multiple %0, 8 : i32
    %c0 = arith.constant 0 : index
    %2 = arith.index_cast %1 : i32 to index
    %c0_0 = arith.constant 0 : index
    %3 = vector.load %arg2[%c0, %2, %c0_0] : memref<1x16x32xbf16, #tpu.memory_space<vmem>>, vector<1x8x32xbf16>
    %4 = vector.shape_cast %3 : vector<1x8x32xbf16> to vector<8x32xbf16>
    %c0_1 = arith.constant 0 : index
    %c0_2 = arith.constant 0 : index
    %c0_3 = arith.constant 0 : index
    %5 = vector.load %arg2[%c0_1, %c0_2, %c0_3] : memref<1x16x32xbf16, #tpu.memory_space<vmem>>, vector<1x16x32xbf16>
    %6 = vector.shape_cast %5 : vector<1x16x32xbf16> to vector<16x32xbf16>
    %c0_4 = arith.constant 0 : index
    %c0_5 = arith.constant 0 : index
    %7 = vector.load %arg3[%c0_4, %c0_5] : memref<32x96xbf16, #tpu.memory_space<vmem>>, vector<32x96xbf16>
    %c0_6 = arith.constant 0 : index
    %c0_7 = arith.constant 0 : index
    %8 = vector.load %arg4[%c0_6, %c0_7] : memref<1x96xf32, #tpu.memory_space<vmem>>, vector<1x96xf32>
    %9 = vector.extract_strided_slice %7 {offsets = [0, 0], sizes = [32, 32], strides = [1, 1]} : vector<32x96xbf16> to vector<32x32xbf16>
    %cst = arith.constant dense<0.000000e+00> : vector<8x32xf32>
    %10 = tpu.matmul %4, %9, %cst {dimension_numbers = #tpu.dot_dimension_numbers<[1], [0], [0], [1], [0, 0, 1, 1], [], []>} : vector<8x32xbf16>, vector<32x32xbf16>, vector<8x32xf32> -> vector<8x32xf32>
    %11 = vector.extract_strided_slice %8 {offsets = [0, 0], sizes = [1, 32], strides = [1, 1]} : vector<1x96xf32> to vector<1x32xf32>
    %12 = vector.broadcast %11 : vector<1x32xf32> to vector<8x32xf32>
    %13 = arith.addf %10, %12 : vector<8x32xf32>
    %cst_8 = arith.constant 0.353553385 : f32
    %14 = vector.broadcast %cst_8 : f32 to vector<8x32xf32>
    %15 = arith.mulf %13, %14 : vector<8x32xf32>
    %16 = vector.extract_strided_slice %7 {offsets = [0, 32], sizes = [32, 64], strides = [1, 1]} : vector<32x96xbf16> to vector<32x64xbf16>
    %cst_9 = arith.constant dense<0.000000e+00> : vector<16x64xf32>
    %17 = tpu.matmul %6, %16, %cst_9 {dimension_numbers = #tpu.dot_dimension_numbers<[1], [0], [0], [1], [0, 0, 1, 1], [], []>} : vector<16x32xbf16>, vector<32x64xbf16>, vector<16x64xf32> -> vector<16x64xf32>
    %18 = vector.extract_strided_slice %8 {offsets = [0, 32], sizes = [1, 64], strides = [1, 1]} : vector<1x96xf32> to vector<1x64xf32>
    %19 = vector.broadcast %18 : vector<1x64xf32> to vector<16x64xf32>
    %20 = arith.addf %17, %19 : vector<16x64xf32>
    %21 = vector.extract_strided_slice %20 {offsets = [0, 0], sizes = [16, 32], strides = [1, 1]} : vector<16x64xf32> to vector<16x32xf32>
    %22 = vector.extract_strided_slice %20 {offsets = [0, 32], sizes = [16, 32], strides = [1, 1]} : vector<16x64xf32> to vector<16x32xf32>
    %23 = arith.truncf %15 : vector<8x32xf32> to vector<8x32xbf16>
    %24 = vector.extract_strided_slice %23 {offsets = [0, 0], sizes = [8, 8], strides = [1, 1]} : vector<8x32xbf16> to vector<8x8xbf16>
    %25 = vector.extract_strided_slice %23 {offsets = [0, 8], sizes = [8, 8], strides = [1, 1]} : vector<8x32xbf16> to vector<8x8xbf16>
    %26 = vector.extract_strided_slice %23 {offsets = [0, 16], sizes = [8, 8], strides = [1, 1]} : vector<8x32xbf16> to vector<8x8xbf16>
    %27 = vector.extract_strided_slice %23 {offsets = [0, 24], sizes = [8, 8], strides = [1, 1]} : vector<8x32xbf16> to vector<8x8xbf16>
    %28 = vector.shape_cast %24 : vector<8x8xbf16> to vector<1x8x8xbf16>
    %29 = vector.shape_cast %25 : vector<8x8xbf16> to vector<1x8x8xbf16>
    %30 = vector.shape_cast %26 : vector<8x8xbf16> to vector<1x8x8xbf16>
    %31 = vector.shape_cast %27 : vector<8x8xbf16> to vector<1x8x8xbf16>
    %32 = tpu.concatenate %28, %29, %30, %31 in 0 : vector<1x8x8xbf16>, vector<1x8x8xbf16>, vector<1x8x8xbf16>, vector<1x8x8xbf16> -> vector<4x8x8xbf16>
    %33 = arith.truncf %21 : vector<16x32xf32> to vector<16x32xbf16>
    %34 = vector.extract_strided_slice %33 {offsets = [0, 0], sizes = [16, 8], strides = [1, 1]} : vector<16x32xbf16> to vector<16x8xbf16>
    %35 = vector.extract_strided_slice %33 {offsets = [0, 8], sizes = [16, 8], strides = [1, 1]} : vector<16x32xbf16> to vector<16x8xbf16>
    %36 = vector.extract_strided_slice %33 {offsets = [0, 16], sizes = [16, 8], strides = [1, 1]} : vector<16x32xbf16> to vector<16x8xbf16>
    %37 = vector.extract_strided_slice %33 {offsets = [0, 24], sizes = [16, 8], strides = [1, 1]} : vector<16x32xbf16> to vector<16x8xbf16>
    %38 = vector.shape_cast %34 : vector<16x8xbf16> to vector<1x16x8xbf16>
    %39 = vector.shape_cast %35 : vector<16x8xbf16> to vector<1x16x8xbf16>
    %40 = vector.shape_cast %36 : vector<16x8xbf16> to vector<1x16x8xbf16>
    %41 = vector.shape_cast %37 : vector<16x8xbf16> to vector<1x16x8xbf16>
    %42 = tpu.concatenate %38, %39, %40, %41 in 0 : vector<1x16x8xbf16>, vector<1x16x8xbf16>, vector<1x16x8xbf16>, vector<1x16x8xbf16> -> vector<4x16x8xbf16>
    %43 = arith.truncf %22 : vector<16x32xf32> to vector<16x32xbf16>
    %44 = vector.extract_strided_slice %43 {offsets = [0, 0], sizes = [16, 8], strides = [1, 1]} : vector<16x32xbf16> to vector<16x8xbf16>
    %45 = vector.extract_strided_slice %43 {offsets = [0, 8], sizes = [16, 8], strides = [1, 1]} : vector<16x32xbf16> to vector<16x8xbf16>
    %46 = vector.extract_strided_slice %43 {offsets = [0, 16], sizes = [16, 8], strides = [1, 1]} : vector<16x32xbf16> to vector<16x8xbf16>
    %47 = vector.extract_strided_slice %43 {offsets = [0, 24], sizes = [16, 8], strides = [1, 1]} : vector<16x32xbf16> to vector<16x8xbf16>
    %48 = vector.shape_cast %44 : vector<16x8xbf16> to vector<1x16x8xbf16>
    %49 = vector.shape_cast %45 : vector<16x8xbf16> to vector<1x16x8xbf16>
    %50 = vector.shape_cast %46 : vector<16x8xbf16> to vector<1x16x8xbf16>
    %51 = vector.shape_cast %47 : vector<16x8xbf16> to vector<1x16x8xbf16>
    %52 = tpu.concatenate %48, %49, %50, %51 in 0 : vector<1x16x8xbf16>, vector<1x16x8xbf16>, vector<1x16x8xbf16>, vector<1x16x8xbf16> -> vector<4x16x8xbf16>
    "tpu.trace_start"() <{level = 10 : i32, message = "hqd,hkd->hqk"}> : () -> ()
    %cst_10 = arith.constant dense<0.000000e+00> : vector<4x8x16xf32>
    %53 = tpu.matmul %32, %42, %cst_10 {dimension_numbers = #tpu.dot_dimension_numbers<[2], [2], [1], [1], [0, 0, 0, 1, 1, 1], [0], [0]>} : vector<4x8x8xbf16>, vector<4x16x8xbf16>, vector<4x8x16xf32> -> vector<4x8x16xf32>
    "tpu.trace_stop"() : () -> ()
    %cst_11 = arith.constant dense<0xFF800000> : vector<4x8xf32>
    %54 = vector.multi_reduction <maximumf>, %53, %cst_11 [2] : vector<4x8x16xf32> to vector<4x8xf32>
    %55 = vector.shape_cast %54 : vector<4x8xf32> to vector<4x8x1xf32>
    %56 = vector.broadcast %55 : vector<4x8x1xf32> to vector<4x8x16xf32>
    %57 = arith.subf %53, %56 : vector<4x8x16xf32>
    %58 = math.exp %57 : vector<4x8x16xf32>
    %cst_12 = arith.constant dense<0.000000e+00> : vector<4x8xf32>
    %59 = vector.multi_reduction <add>, %58, %cst_12 [2] : vector<4x8x16xf32> to vector<4x8xf32>
    %60 = vector.shape_cast %59 : vector<4x8xf32> to vector<4x8x1xf32>
    %61 = tpu.reciprocal %60 {approx = true} : vector<4x8x1xf32> -> vector<4x8x1xf32>
    %62 = arith.truncf %58 : vector<4x8x16xf32> to vector<4x8x16xbf16>
    "tpu.trace_start"() <{level = 10 : i32, message = "hqk,hkd->hqd"}> : () -> ()
    %cst_13 = arith.constant dense<0.000000e+00> : vector<4x8x8xf32>
    %63 = tpu.matmul %62, %52, %cst_13 {dimension_numbers = #tpu.dot_dimension_numbers<[2], [1], [1], [2], [0, 0, 0, 1, 1, 2], [0], [0]>} : vector<4x8x16xbf16>, vector<4x16x8xbf16>, vector<4x8x8xf32> -> vector<4x8x8xf32>
    "tpu.trace_stop"() : () -> ()
    %64 = vector.broadcast %61 : vector<4x8x1xf32> to vector<4x8x8xf32>
    %65 = arith.mulf %63, %64 : vector<4x8x8xf32>
    %66 = arith.truncf %65 : vector<4x8x8xf32> to vector<4x8x8xbf16>
    %67 = vector.extract_strided_slice %66 {offsets = [0, 0, 0], sizes = [1, 8, 8], strides = [1, 1, 1]} : vector<4x8x8xbf16> to vector<1x8x8xbf16>
    %68 = vector.shape_cast %67 : vector<1x8x8xbf16> to vector<8x8xbf16>
    %69 = vector.extract_strided_slice %66 {offsets = [1, 0, 0], sizes = [1, 8, 8], strides = [1, 1, 1]} : vector<4x8x8xbf16> to vector<1x8x8xbf16>
    %70 = vector.shape_cast %69 : vector<1x8x8xbf16> to vector<8x8xbf16>
    %71 = vector.extract_strided_slice %66 {offsets = [2, 0, 0], sizes = [1, 8, 8], strides = [1, 1, 1]} : vector<4x8x8xbf16> to vector<1x8x8xbf16>
    %72 = vector.shape_cast %71 : vector<1x8x8xbf16> to vector<8x8xbf16>
    %73 = vector.extract_strided_slice %66 {offsets = [3, 0, 0], sizes = [1, 8, 8], strides = [1, 1, 1]} : vector<4x8x8xbf16> to vector<1x8x8xbf16>
    %74 = vector.shape_cast %73 : vector<1x8x8xbf16> to vector<8x8xbf16>
    %75 = tpu.concatenate %68, %70, %72, %74 in 1 : vector<8x8xbf16>, vector<8x8xbf16>, vector<8x8xbf16>, vector<8x8xbf16> -> vector<8x32xbf16>
    %c0_14 = arith.constant 0 : index
    %c0_15 = arith.constant 0 : index
    %76 = vector.load %arg5[%c0_14, %c0_15] : memref<32x32xbf16, #tpu.memory_space<vmem>>, vector<32x32xbf16>
    %cst_16 = arith.constant dense<0.000000e+00> : vector<8x32xf32>
    %77 = tpu.matmul %75, %76, %cst_16 {dimension_numbers = #tpu.dot_dimension_numbers<[1], [0], [0], [1], [0, 0, 1, 1], [], []>} : vector<8x32xbf16>, vector<32x32xbf16>, vector<8x32xf32> -> vector<8x32xf32>
    %c0_17 = arith.constant 0 : index
    %c0_18 = arith.constant 0 : index
    %78 = vector.load %arg6[%c0_17, %c0_18] : memref<1x32xf32, #tpu.memory_space<vmem>>, vector<1x32xf32>
    %79 = vector.broadcast %78 : vector<1x32xf32> to vector<8x32xf32>
    %80 = arith.addf %77, %79 : vector<8x32xf32>
    %c0_19 = arith.constant 0 : index
    %c0_20 = arith.constant 0 : index
    %c0_21 = arith.constant 0 : index
    %81 = vector.load %arg7[%c0_19, %c0_20, %c0_21] : memref<1x8x32xf32, #tpu.memory_space<vmem>>, vector<1x8x32xf32>
    %82 = vector.shape_cast %81 : vector<1x8x32xf32> to vector<8x32xf32>
    %83 = vector.shape_cast %80 : vector<8x32xf32> to vector<1x8x32xf32>
    tpu.vector_store %arg7[%c0_19, %c0_20, %c0_21], %83 {strides = array<i32>} : memref<1x8x32xf32, #tpu.memory_space<vmem>>, vector<1x8x32xf32>,
    return
  }
  func.func @transform_0(%arg0: i32, %arg1: i32) -> (i32, i32, i32) {
    %c0_i32 = arith.constant 0 : i32
    %c0_i32_0 = arith.constant 0 : i32
    %c0_i32_1 = arith.constant 0 : i32
    return %arg0, %c0_i32, %c0_i32_0 : i32, i32, i32
  }
  func.func @transform_1(%arg0: i32, %arg1: i32) -> (i32, i32) {
    %c0_i32 = arith.constant 0 : i32
    %c0_i32_0 = arith.constant 0 : i32
    %c0_i32_1 = arith.constant 0 : i32
    return %c0_i32, %c0_i32_0 : i32, i32
  }
  func.func @transform_2(%arg0: i32, %arg1: i32) -> (i32, i32) {
    %c0_i32 = arith.constant 0 : i32
    %c0_i32_0 = arith.constant 0 : i32
    %c0_i32_1 = arith.constant 0 : i32
    return %c0_i32, %c0_i32_0 : i32, i32
  }
  func.func @transform_3(%arg0: i32, %arg1: i32) -> (i32, i32) {
    %c0_i32 = arith.constant 0 : i32
    %c0_i32_0 = arith.constant 0 : i32
    %c0_i32_1 = arith.constant 0 : i32
    return %c0_i32, %c0_i32_0 : i32, i32
  }
  func.func @transform_4(%arg0: i32, %arg1: i32) -> (i32, i32) {
    %c0_i32 = arith.constant 0 : i32
    %c0_i32_0 = arith.constant 0 : i32
    %c0_i32_1 = arith.constant 0 : i32
    return %c0_i32, %c0_i32_0 : i32, i32
  }
  func.func @transform_5(%arg0: i32, %arg1: i32) -> (i32, i32, i32) {
    %c0_i32 = arith.constant 0 : i32
    %c0_i32_0 = arith.constant 0 : i32
    return %arg0, %arg1, %c0_i32 : i32, i32, i32
  }
}

</mosaic_0001>

<bundles_post_ra>
// kernel: tpu_custom_call.1
= control target key start
LH: loop header
LB: loop body
LE: loop exit
PB: predicated region body
PF: predicated region fallthrough
CT: control target
= control target key end

     0   :  { %s1999_s0 = inlined_call_operand.hbm [shape: bf16[2,16,32], index: 0, kind: input, shape index: {}]   ;;  %s2000_s1 = inlined_call_operand.hbm [shape: bf16[32,96], index: 1, kind: input, shape index: {}]   ;;  %s2001_s2 = inlined_call_operand.vmem [shape: f32[1,96], index: 2, kind: input, shape index: {}]   ;;  %s2002_s3 = inlined_call_operand.hbm [shape: bf16[32,32], index: 3, kind: input, shape index: {}]   ;;  %s2003_s4 = inlined_call_operand.vmem [shape: f32[1,32], index: 4, kind: input, shape index: {}]   ;;  %s2004_s5 = inlined_call_operand.hbm [shape: f32[2,16,32], index: 5, kind: output, shape index: {}]  }
   0x1   :  { %2019 = sst [smem:[#allocation17_spill]] %s2000_s1 }
   0x2   :  { %2020 = sst [smem:[#allocation18_spill]] %s2002_s3 }
   0x3   :  { %2021 = sst [smem:[#allocation19_spill]] %s2004_s5 }
   0x4   :  { %10 = vsyncpa [#allocation3], 0 }
   0x5   :  { %12 = vsyncpa [#allocation3 + $0x1], 0 }
   0x6   :  { %13 = vsyncpa [#allocation6], 0 }
   0x7   :  { %14 = vsyncpa [#allocation4], 0 }
   0x8   :  { %16 = vsyncpa [#allocation4 + $0x1], 0  ;;  %s1613_s18 = smov 0   ;;  %s1615_s19 = smov 0  }
   0x9   :  { %s1617_s20 = smov 0   ;;  %s1619_s21 = smov 0  }
   0xa   :  { %s1621_s22 = smov 0   ;;  %s1623_s23 = smov 0  }
   0xb   :  { %s1625_s24 = smov 0   ;;  %s1627_s25 = smov 0  }
   0xc   :  { %s1629_s26 = smov 0   ;;  %s1631_s27 = smov 0  }
   0xd   :  { %s1633_s28 = smov 0  }
   0xe LB: > { %2022 = sst [smem:[#allocation12_spill]] %s1526_s18  ;;  %s1062_s29 = sadd.s32 4294967295, %s1566_s28   ;;  %s1566_s28 = sphi %s1633_s28, %s22_s28   ;;  %s1562_s27 = sphi %s1631_s27, %s2059_s27   ;;  %s1558_s26 = sphi %s1629_s26, %s2051_s26   ;;  %s1554_s25 = sphi %s1627_s25, %s2058_s25   ;;  %s1550_s24 = sphi %s1625_s24, %s2050_s24   ;;  %s1546_s23 = sphi %s1623_s23, %s2057_s23   ;;  %s1542_s22 = sphi %s1621_s22, %s2056_s22   ;;  %s1538_s21 = sphi %s1619_s21, %s2055_s21   ;;  %s1534_s20 = sphi %s1617_s20, %s2054_s20   ;;  %s1530_s19 = sphi %s1615_s19, %s2053_s19   ;;  %s1526_s18 = sphi %s1613_s18, %s2052_s18  }
   0xf   : > { %2023 = sst [smem:[#allocation13_spill]] %s1558_s26  ;;  %s1063_s30 = sadd.s32 4294967294, %s1566_s28  }
  0x10   : > { %p54_p0 = scmp.ne.s32.totalorder %s1542_s22, %s1538_s21  ;;  %p1669_p1 = scmp.eq.s32.totalorder %s1062_s29, 0 }
  0x11   : > { %p163_p2 = scmp.ne.s32.totalorder %s1534_s20, %s1530_s19  ;;  %p164_p4 = scmp.eq.s32.totalorder %s1062_s29, 3 }
  0x12   : > { %s2024_s6 = scalar_select %p1669_p1, 1, 0 }
  0x13   : > { %p1678_p3 = por %p1669_p1, %p54_p0  ;;  %p169_p5 = scmp.ne.s32.totalorder %s1530_s19, %s1526_s18 }
  0x14   : > { %p170_p6 = scmp.eq.s32.totalorder %s1063_s30, 3  ;;  %p1684_p7 = por %p164_p4, %p163_p2 }
  0x15   : > { %s2025_s8 = scalar_select %p1678_p3, 1, 0 }
  0x16   : > { %s2026_s9 = scalar_select %p1684_p7, 1, 0 }
  0x17   : > { %p1064_p8 = scmp.ge.s32.totalorder %s1566_s28, 1  ;;  %p1689_p9 = por %p170_p6, %p169_p5 }
  0x18   : > { %2027 = sst [smem:[#allocation14_spill]] %s2026_s9  ;;  %p177_p10 = scmp.lt.s32.totalorder %s1566_s28, 5 }
  0x19   : > { %s2028_s10 = scalar_select %p1689_p9, 1, 0 }
  0x1a   : > { %p1694_p11 = pnand %p1064_p8, %p177_p10  ;;  %s1568_s12 = smov [#allocation5]  }
  0x1b   : > { %2029 = sst [smem:[#allocation15_spill]] %s2028_s10  ;;  %s189_s13 = sshll.u32 %s1568_s12, 4  ;;  %s190_s13 = int_to_ptr.vmem [resolvable:$true] %s189_s13 }
  0x1c   : > { %s2030_s11 = scalar_select %p1694_p11, 1, 0 }
  0x1d   : > { %p1211_p12 = pneg %p1694_p11  ;;  %s1569_s15 = smov [#allocation7]  }
  0x1e   : > { %s205_s16 = sshll.u32 %s1569_s15, 4  ;;  %s2032_s1 = sld [smem:[#allocation17_spill]]  ;;  %s1706_s16 = int_to_ptr.vmem [resolvable:$true] %s205_s16 }
  0x1f   : > { %p1702_p13 = pnand %p1211_p12, %p1669_p1 }
  0x21   : > { %p1356_p2 = pneg %p1702_p13 }
  0x24   : > { %s1354_s29 = scalar_lea.hbm %s2032_s1, 256 }
  0x25   : > { %p1355_p0 = scmp.ne.s32.totalorder %s2032_s1, %s1354_s29  ;;  %p1361_p6 = scmp.lt.u32.totalorder %s1354_s29, %s2032_s1 }
  0x27   : > { %p1357_p4 = pnand %p1356_p2, %p1355_p0 }
  0x29   : > { %p1358_p5 = pneg %p1357_p4 }
  0x2b   : > { %p1363_p8 = pnand %p1361_p6, %p1358_p5 }
  0x2d   : > { %1366 = shalt.err (!%p1363_p8)
}
  0x2e   : > { %s1367_s15 = scalar_lea.vmem %s190_s13, 256  ;;  %p1375_p7 = scmp.lt.s32.totalorder %s190_s13, %s190_s13 }
  0x2f   : > { %p1368_p10 = scmp.ne.s32.totalorder %s190_s13, %s1367_s15  ;;  %p1376_p1 = scmp.lt.s32.totalorder %s1367_s15, %s1367_s15 }
  0x31   : > { %p1370_p12 = pnand %p1368_p10, %p1356_p2  ;;  %p1377_p3 = por %p1376_p1, %p1375_p7 }
  0x33   : > { %p1371_p9 = pneg %p1370_p12 }
  0x35   : > { %p1378_p11 = pnand %p1377_p3, %p1371_p9 }
  0x37   : > { %1381 = shalt.err (!%p1378_p11)
}
  0x38   : > { %s2015_s17 = smov 64   ;;  %s2016_s21 = smov 4  }
  0x39   : > { %1214 = dma.hbm_to_vmem [thread:$0]  (!%p1702_p13), %s2032_s1, 256, %s190_s13, [#allocation6], %s2015_s17, %s2015_s17, %s2016_s21  }
  0x3a   : > { %s2033_s3 = sld [smem:[#allocation18_spill]] }
  0x40   : > { %s1382_s12 = scalar_lea.hbm %s2033_s3, 256 }
  0x41   : > { %p1383_p1 = scmp.ne.s32.totalorder %s2033_s3, %s1382_s12  ;;  %p1389_p9 = scmp.lt.u32.totalorder %s1382_s12, %s2033_s3 }
  0x43   : > { %p1385_p3 = pnand %p1383_p1, %p1356_p2 }
  0x45   : > { %p1386_p7 = pneg %p1385_p3 }
  0x47   : > { %p1391_p11 = pnand %p1389_p9, %p1386_p7 }
  0x49   : > { %1394 = shalt.err (!%p1391_p11)
}
  0x4a   : > { %s1395_s13 = scalar_lea.vmem %s1706_s16, 256  ;;  %p1403_p6 = scmp.lt.s32.totalorder %s1706_s16, %s1706_s16 }
  0x4b   : > { %p1396_p0 = scmp.ne.s32.totalorder %s1706_s16, %s1395_s13  ;;  %p1404_p8 = scmp.lt.s32.totalorder %s1395_s13, %s1395_s13 }
  0x4d   : > { %p1398_p4 = pnand %p1396_p0, %p1356_p2  ;;  %p1405_p10 = por %p1404_p8, %p1403_p6 }
  0x4f   : > { %p1399_p5 = pneg %p1398_p4 }
  0x51   : > { %p1406_p12 = pnand %p1405_p10, %p1399_p5 }
  0x53   : > { %1409 = shalt.err (!%p1406_p12)
}
  0x54   : > { %1217 = dma.hbm_to_vmem [thread:$0]  (!%p1702_p13), %s2033_s3, 256, %s1706_s16, [#allocation6], %s2015_s17, %s2015_s17, %s2016_s21  }
  0x55   : > { %s31_s9 = sadd.s32 1, %s1558_s26  ;;  %s34_s14 = sadd.s32 1, %s1562_s27 }
  0x56   : > { %p32_p2 = scmp.ge.s32.totalorder %s31_s9, 2  ;;  %s41_s7 = sadd.s32 1, %s1546_s23 }
  0x57   : > { %p48_p1 = scmp.ne.s32.totalorder %s1546_s23, %s1542_s22  ;;  %p49_p3 = scmp.eq.s32.totalorder %s1566_s28, 0 }
  0x58   : > { %s2061_s9 = smov (%p32_p2, %s31_s9), 0  ;;  %s2063_s14 = smov (!%p32_p2, %s34_s14), %s1562_s27 }
  0x59   : > { %2034 = sst [smem:[#allocation16_spill]] %s2061_s9  ;;  %p1770_p7 = por %p49_p3, %p48_p1 }
  0x5a   : > { %s149_s29 = ssub.s32 %s1558_s26, %s2061_s9  ;;  %p36_p13 = scmp.ge.s32.totalorder %s2063_s14, 2 }
  0x5b   : > { %p1228_p9 = scmp.lt.s32.totalorder %s1566_s28, 4  ;;  %s222_s16 = sand.u32 1, %s1546_s23  }
  0x5c   : > { %s1101_s30 = sshll.u32 %s1562_s27, 7  ;;  %s2065_s14 = smov (%p36_p13, %s2063_s14), 0 }
  0x5d   : > { %s1068_s12 = sshll.u32 %s222_s16, 3  ;;  %s38_s15 = ssub.s32 %s1562_s27, %s2065_s14 }
  0x5e   : > { %p39_p11 = scmp.eq.s32.totalorder %s38_s15, 0  ;;  %s150_s13 = sor.u32 %s149_s29, %s38_s15 }
  0x5f   : > { %p151_p0 = scmp.eq.s32.totalorder %s150_s13, 0  ;;  %s1786_s17 = scalar_lea.hbm %s1999_s0, %s1101_s30 }
  0x60   : > { %s1789_s21 = scalar_select %p39_p11, %s1546_s23, %s41_s7  }
  0x61   : > { %s2036_s1 = sadd.s32 1, %s1534_s20  ;;  %s226_s9 = scalar_lea.vmem [#allocation2], %s1068_s12 }
  0x62   : > { %s1794_s3 = scalar_select %p151_p0, %s1534_s20, %s2036_s1  }
  0x63   : > { %s233_s26 = sshll.u32 %s226_s9, 4  ;;  %p1800_p4 = pnand %p1228_p9, %p1770_p7  ;;  %s1804_s26 = int_to_ptr.vmem [resolvable:$true] %s233_s26 }
  0x64   : > { %s1806_s30 = scalar_lea.sflag [#allocation3], %s222_s16  ;;  %s1410_s7 = scalar_lea.hbm %s1786_s17, 128 }
  0x65   : > { %p1411_p5 = scmp.ne.s32.totalorder %s1786_s17, %s1410_s7  ;;  %p1412_p6 = pneg %p1800_p4 }
  0x66   : > { %s1415_s10 = scalar_lea.hbm %s1999_s0, 256  ;;  %p1416_p12 = scmp.lt.u32.totalorder %s1786_s17, %s1999_s0 }
  0x67   : > { %p1413_p8 = pnand %p1412_p6, %p1411_p5  ;;  %p1417_p2 = scmp.lt.u32.totalorder %s1415_s10, %s1410_s7 }
  0x68   : > { %p1419_p3 = scmp.lt.u32.totalorder %s1410_s7, %s1786_s17 }
  0x69   : > { %p1414_p10 = pneg %p1413_p8  ;;  %p1418_p1 = por %p1417_p2, %p1416_p12 }
  0x6b   : > { %p1420_p7 = por %p1419_p3, %p1418_p1 }
  0x6d   : > { %p1421_p13 = pnand %p1420_p7, %p1414_p10 }
  0x6f   : > { %1424 = shalt.err (!%p1421_p13)
}
  0x70   : > { %s1425_s16 = scalar_lea.vmem %s1804_s26, 128  ;;  %s1572_s13 = smov [#allocation2]  }
  0x71   : > { %p1426_p9 = scmp.ne.s32.totalorder %s1804_s26, %s1425_s16  ;;  %s1430_s5 = sshll.u32 %s1572_s13, 4  ;;  %s1431_s5 = int_to_ptr.vmem [resolvable:$false] %s1430_s5 }
  0x72   : > { %s1432_s18 = scalar_lea.vmem %s1431_s5, 256  ;;  %p1433_p5 = scmp.lt.s32.totalorder %s1804_s26, %s1431_s5 }
  0x73   : > { %p1428_p11 = pnand %p1426_p9, %p1412_p6  ;;  %p1434_p8 = scmp.lt.s32.totalorder %s1432_s18, %s1425_s16 }
  0x75   : > { %p1429_p0 = pneg %p1428_p11  ;;  %p1435_p12 = por %p1434_p8, %p1433_p5 }
  0x77   : > { %p1436_p2 = pnand %p1435_p12, %p1429_p0 }
  0x79   : > { %1439 = shalt.err (!%p1436_p2)
}
  0x7a   : > { %s2038_s7 = smov 4   ;;  %s2039_s1 = smov 64  }
  0x7b   : > { %1221 = dma.hbm_to_vmem [thread:$0]  (!%p1800_p4), %s1786_s17, 128, %s1804_s26, %s1806_s30, %s2039_s1, %s2039_s1, %s2038_s7  }
  0x7c   : > { %p2040_p6 = scmp.ne.s32.totalorder %s2030_s11, 0 }
  0x7d   : > { %s247_s9 = sand.u32 (!%p2040_p6), 1, %s1542_s22   ;;  %p2041_p10 = scmp.ne.s32.totalorder (!%p2040_p6), %s2025_s8, 0 }
  0x7e   : > { %245 = sbr.rel (%p2040_p6) target bundleno = 1592 (0x638), region = 40  ;;  %s1840_s10 = sshll.u32 (!%p2040_p6), %s247_s9, 3 }
  0x7f   : > { %s248_s12 = scalar_lea.sflag (!%p2040_p6), [#allocation3], %s247_s9  ;;  %s251_s15 = scalar_lea.vmem (!%p2040_p6), [#allocation2], %s1840_s10 }
  0x85   : > { %1513 = dma.done.wait (%p2041_p10), %s248_s12, 128  }
  0x86   : > { %1515 = vsyncadd (%p2041_p10), %s248_s12, 4294967168  ;;  %p2042_p1 = scmp.ne.s32.totalorder %s2024_s6, 0 }
  0x88   : > { %1517 = dma.done.wait (%p2042_p1), [#allocation6], 512  }
  0x89   : > { %1519 = vsyncadd (%p2042_p1), [#allocation6], 4294966784  ;;  %v1573_v0 = vmov 0.0   ;;  %vm1574_vm0 = vmmov 0   ;;  %s1076_s26 = sshll.u32 %s1550_s24, 3  ;;  %v1333_v1 = vld [vmem:[#allocation5] sm:$0xff]  }
  0x8a   : > { %1135 = vmatprep.subr.bf16.mxu1 %v1573_v0  ;;  %1127 = vmatprep.subr.bf16.mxu0 %v1573_v0  ;;  %s288_s8 = sshra.s32 %s1076_s26, 3  ;;  %s1575_s6 = smov 96   ;;  %v1334_v2 = vld [vmem:[#allocation5 + $0x8] sm:$0xff]   ;;  %v1078_v3 = vld [vmem:[%s2001_s2] ss:$0 sm:$0xff]  ;;  %vm318_vm1 = vcmask 261120  }
  0x8b   : > { %1139 = vmatprep.mubr.msk.bf16.mxu1 %vm1574_vm0, %v1573_v0  ;;  %1131 = vmatprep.mubr.msk.bf16.mxu0 %vm1574_vm0, %v1573_v0  ;;  %s1077_s11 = sshll.u32 %s288_s8, 2  ;;  %v1335_v7 = vld [vmem:[%s251_s15] sm:$0xff]   ;;  %vm437_vm2 = vcmask 64512   ;;  %s1576_s16 = smov 112   ;;  %vm622_vm3 = vcmask 130048   ;;  %vm873_vm4 = vcmask 195584  }
  0x8c   : > { %368 = vrot.lane.b32.xlu0 %v1333_v1, %s1575_s6  ;;  %1128 = vmatpush3.bf16.msra.mxu0 %v1333_v1  ;;  %s291_s17 = scalar_lea.vmem %s251_s15, %s1077_s11 [#allocation2]  ;;  %s1577_s13 = smov 120  }
  0x8d   : > { %1129 = vmatprep.subr.bf16.mxu0 %v1573_v0  ;;  %374 = vrot.lane.b32.xlu1 %v1078_v3, %s1575_s6  ;;  %v292_v4 = vld [vmem:[%s291_s17] sm:$0xf]  ;;  %s1578_s5 = smov 104   ;;  %s1579_s18 = smov 8  }
  0x8e   : > { %s1580_s7 = smov 16   ;;  %s1581_s1 = smov 24  }
  0x8f   : > { %s283_s9 = sand.u32 1, %s1530_s19   ;;  %s1097_s12 = sshll.u32 %s1554_s25, 1 }
  0x90   : > { %370 = vrot.lane.b32.xlu0 %v1334_v2, %s1575_s6  ;;  %1130 = vmatpush3.bf16.msra.mxu0 %v1334_v2  ;;  %s1075_s10 = sshll.u32 %s283_s9, 3  ;;  %s954_s15 = sadd.s32 %s1550_s24, %s1097_s12 }
  0x91   : > { %1143 = vmatprep.subr.bf16.mxu0 %v1573_v0  ;;  %s2043_s11 = sld [smem:[#allocation14_spill]]  ;;  %s285_s17 = scalar_lea.vmem [#allocation8], %s1075_s10 }
  0x92   : > { %s958_s29 = sshll.u32 %s285_s17, 4  ;;  %s943_s24 = scalar_lea.sflag [#allocation4], %s283_s9  ;;  %s1938_s29 = int_to_ptr.vmem [resolvable:$true] %s958_s29 }
  0x93   : > { %1132 = vmatmul.mubr.msk.bf16.vlgmr.msra.gmra.mrb[0].mxu0 %vm318_vm1, %v292_v4  ;;  %s1440_s25 = scalar_lea.vmem %s1938_s29, 128 }
  0x94   : > { %1145 = vmatprep.mubr.msk.bf16.mxu0 %vm1574_vm0, %v1573_v0  ;;  %p1441_p4 = scmp.ne.s32.totalorder %s1938_s29, %s1440_s25 }
  0x97   : > { %p2045_p3 = scmp.ne.s32.totalorder %s2043_s11, 0 }
  0x99   : > { %p1442_p7 = pnand %p1441_p4, %p2045_p3 }
  0x9b   : > { %p1443_p13 = pneg %p1442_p7 }
  0xfe   : > { %v369_v5 = vpop.permute.xlu0 %368 }
  0xff   : > { %1136 = vmatpush3.bf16.msra.mxu1 %v369_v5  ;;  %v375_v13 = vpop.permute.xlu1 %374 }
 0x100   : > { %1137 = vmatprep.subr.bf16.mxu1 %v1573_v0 }
 0x102   : > { %v371_v6 = vpop.permute.xlu0 %370 }
 0x103   : > { %1138 = vmatpush3.bf16.msra.mxu1 %v371_v6 }
 0x104   : > { %1149 = vmatprep.subr.bf16.mxu1 %v1573_v0 }
 0x106   : > { %1140 = vmatmul.mubr.msk.bf16.vlgmr.msra.gmra.mrb[0].mxu1 %vm318_vm1, %v1335_v7 }
 0x107   : > { %1151 = vmatprep.mubr.msk.bf16.mxu1 %vm1574_vm0, %v1573_v0 }
 0x166   : > { %v356_v8 = vpop.f32.mrb[0].mxu0 }
 0x167   : > { %v1133_v9 = vpop.f32.mrb[1].mxu0  ;;  %v357_v12 = vadd.f32 %v1078_v3, %v356_v8 }
 0x168   : > { %v359_v10 = vpop.f32.mrb[2].mxu0 }
 0x169   : > { %v1134_v11 = vpop.f32.mrb[3].mxu0  ;;  %v362_v20 = vmul.f32 0.35355338, %v357_v12 }
 0x16b   : > { %v421_v22 = vpack.c.bf16 %v362_v20, %v362_v20 }
 0x1d9   : > { %v414_v14 = vpop.f32.mrb[0].mxu1 }
 0x1da   : > { %v1141_v15 = vpop.f32.mrb[1].mxu1  ;;  %v415_v17 = vadd.f32 %v414_v14, %v375_v13 }
 0x1db   : > { %v417_v16 = vpop.f32.mrb[2].mxu1 }
 0x1dc   : > { %v418_v18 = vadd.f32 %v417_v16, %v375_v13  ;;  %v1142_v19 = vpop.f32.mrb[3].mxu1 }
 0x1de   : > { %v429_v21 = vpack.c.bf16 %v418_v18, %v415_v17 }
 0x1e0   : > { %433 = vrot.lane.b32.xlu0 %v429_v21, %s1576_s16  ;;  %431 = vrot.lane.b32.xlu1 %v429_v21, %s1577_s13  ;;  %v442_v23 = vsel %vm437_vm2, %v429_v21, 0 }
 0x1e1   : > { %1144 = vmatpush3.bf16.xpose.msra.mxu0 %v442_v23 }
 0x1e2   : > { %1155 = vmatprep.subr.bf16.mxu0 %v1573_v0 }
 0x1e4   : > { %435 = vrot.lane.b32.xlu0 %v429_v21, %s1578_s5  ;;  %423 = vrot.lane.b32.xlu1 %v421_v22, %s1577_s13  ;;  %s2044_s13 = sld [smem:[#allocation19_spill]] }
 0x1e8   : > { %425 = vrot.lane.b32.xlu1 %v421_v22, %s1576_s16  ;;  %1146 = vmatmul.mubr.msk.bf16.vlgmr.msra.gmra.mrb[4].mxu0 %vm437_vm2, %v421_v22 }
 0x1e9   : > { %427 = vrot.lane.b32.xlu0 %v421_v22, %s1578_s5  ;;  %1157 = vmatprep.mubr.msk.bf16.mxu0 %vm1574_vm0, %v1573_v0  ;;  %v1336_v22 = vld [vmem:[#allocation7] sm:$0xff]  }
 0x252   : > { %v434_v24 = vpop.permute.xlu0 %433  ;;  %v432_v25 = vpop.permute.xlu1 %431 }
 0x253   : > { %v534_v26 = vsel %vm437_vm2, %v434_v24, 0  ;;  %v488_v27 = vsel %vm437_vm2, %v432_v25, 0 }
 0x254   : > { %1150 = vmatpush3.bf16.xpose.msra.mxu1 %v488_v27  ;;  %1156 = vmatpush3.bf16.xpose.msra.mxu0 %v534_v26 }
 0x255   : > { %1161 = vmatprep.subr.bf16.mxu1 %v1573_v0  ;;  %1167 = vmatprep.subr.bf16.mxu0 %v1573_v0 }
 0x256   : > { %v424_v28 = vpop.permute.xlu1 %423  ;;  %v436_v29 = vpop.permute.xlu0 %435 }
 0x257   : > { %v580_v31 = vsel %vm437_vm2, %v436_v29, 0 }
 0x25a   : > { %v426_v30 = vpop.permute.xlu1 %425 }
 0x25b   : > { %1152 = vmatmul.mubr.msk.bf16.vlgmr.msra.gmra.mrb[4].mxu1 %vm437_vm2, %v424_v28  ;;  %1158 = vmatmul.mubr.msk.bf16.vlgmr.msra.gmra.mrb[8].mxu0 %vm437_vm2, %v426_v30  ;;  %v428_v32 = vpop.permute.xlu0 %427 }
 0x25c   : > { %1162 = vmatpush3.bf16.xpose.msra.mxu1 %v580_v31  ;;  %1163 = vmatprep.mubr.msk.bf16.mxu1 %vm1574_vm0, %v1573_v0 }
 0x25d   : > { %1173 = vmatprep.subr.bf16.mxu1 %v1573_v0  ;;  %1169 = vmatprep.mubr.msk.bf16.mxu0 %vm1574_vm0, %v1573_v0 }
 0x263   : > { %1164 = vmatmul.mubr.msk.bf16.vlgmr.msra.gmra.mrb[8].mxu1 %vm437_vm2, %v428_v32 }
 0x264   : > { %1175 = vmatprep.mubr.msk.bf16.mxu1 %vm1574_vm0, %v1573_v0 }
 0x2bb   : > { %v478_v33 = vpop.f32.mrb[4].mxu0 }
 0x2bc   : > { %v1147_v34 = vpop.f32.mrb[5].mxu0  ;;  %v623_v35 = vsel %vm622_vm3, %v478_v33, -inf }
 0x2bd   : > { %624 = vmax.xlane.f32.xlu1 %v623_v35  ;;  %v481_v36 = vpop.f32.mrb[6].mxu0 }
 0x2be   : > { %v1148_v37 = vpop.f32.mrb[7].mxu0  ;;  %v1337_v36 = vld [vmem:[#allocation7 + $0x8] sm:$0xff]  }
 0x2ce   : > { %713 = vrot.lane.b32.xlu1 %v432_v25, %s1575_s6 }
 0x32e   : > { %v524_v38 = vpop.f32.mrb[4].mxu1  ;;  %v570_v39 = vpop.f32.mrb[8].mxu0 }
 0x32f   : > { %v1153_v40 = vpop.f32.mrb[5].mxu1  ;;  %v1159_v41 = vpop.f32.mrb[9].mxu0  ;;  %v626_v42 = vsel %vm622_vm3, %v524_v38, -inf  ;;  %v629_v55 = vsel %vm622_vm3, %v570_v39, -inf }
 0x330   : > { %627 = vmax.xlane.f32.xlu0 %v626_v42  ;;  %v527_v43 = vpop.f32.mrb[6].mxu1  ;;  %v573_v44 = vpop.f32.mrb[10].mxu0 }
 0x331   : > { %v1154_v45 = vpop.f32.mrb[7].mxu1  ;;  %v1160_v46 = vpop.f32.mrb[11].mxu0 }
 0x336   : > { %v616_v47 = vpop.f32.mrb[8].mxu1 }
 0x337   : > { %v1165_v48 = vpop.f32.mrb[9].mxu1  ;;  %v632_v49 = vsel %vm622_vm3, %v616_v47, -inf }
 0x338   : > { %v619_v50 = vpop.f32.mrb[10].mxu1  ;;  %633 = vmax.xlane.f32.xlu1 %v632_v49 }
 0x339   : > { %v1166_v51 = vpop.f32.mrb[11].mxu1 }
 0x346   : > { %667 = vrot.lane.b32.xlu0 %v429_v21, %s1575_s6 }
 0x349   : > { %759 = vrot.lane.b32.xlu1 %v434_v24, %s1575_s6 }
 0x34a   : > { %v625_v52 = vpop.xlane.xlu1 %624 }
 0x34b   : > { %v635_v53 = vsub.f32 %v478_v33, %v625_v52 }
 0x34d   : > { %v639_v56 = vmul.f32 1.442695, %v635_v53 }
 0x34e   : > { %v714_v54 = vpop.permute.xlu1 %713 }
 0x34f   : > { %1174 = vmatpush3.bf16.msra.mxu1 %v714_v54  ;;  %1338 = vpow2.f32 %v639_v56 }
 0x350   : > { %1185 = vmatprep.subr.bf16.mxu1 %v1573_v0 }
 0x359   : > { %v1339_v59 = vpop.eup %1338 }
 0x35a   : > { %v663_v62 = vpack.c.bf16 %v1339_v59, %v1339_v59  ;;  %v647_v5 = vsel %vm622_vm3, %v1339_v59, 0.0 }
 0x365   : > { %630 = vmax.xlane.f32.xlu0 %v629_v55 }
 0x37b   : > { %805 = vrot.lane.b32.xlu0 %v436_v29, %s1575_s6  ;;  %s1098_s6 = sshll.u32 %s954_s15, 7 }
 0x37c   : > { %s1936_s5 = scalar_lea.hbm %s2044_s13, %s1098_s6 }
 0x3bd   : > { %v628_v57 = vpop.xlane.xlu0 %627 }
 0x3be   : > { %v636_v58 = vsub.f32 %v524_v38, %v628_v57  ;;  %v1092_v57 = vld [vmem:[%s2003_s4] ss:$0 sm:$0xff] }
 0x3c0   : > { %v641_v60 = vmul.f32 1.442695, %v636_v58 }
 0x3c1   : > { %v668_v61 = vpop.permute.xlu0 %667 }
 0x3c2   : > { %1340 = vpow2.f32 %v641_v60  ;;  %1168 = vmatpush3.bf16.msra.mxu0 %v668_v61 }
 0x3c3   : > { %1179 = vmatprep.subr.bf16.mxu0 %v1573_v0 }
 0x3c5   : > { %1170 = vmatmul.mubr.msk.bf16.vlgmr.msra.gmra.mrb[12].mxu0 %vm622_vm3, %v663_v62  ;;  %v634_v63 = vpop.xlane.xlu1 %633 }
 0x3c6   : > { %1181 = vmatprep.mubr.msk.bf16.mxu0 %vm1574_vm0, %v1573_v0  ;;  %v638_v6 = vsub.f32 %v616_v47, %v634_v63 }
 0x3c8   : > { %v645_v7 = vmul.f32 1.442695, %v638_v6 }
 0x3c9   : > { %v760_v1 = vpop.permute.xlu1 %759 }
 0x3ca   : > { %1180 = vmatpush3.bf16.msra.mxu0 %v760_v1  ;;  %1342 = vpow2.f32 %v645_v7 }
 0x3cb   : > { %1191 = vmatprep.subr.bf16.mxu0 %v1573_v0 }
 0x3cc   : > { %v1341_v2 = vpop.eup %1340 }
 0x3cd   : > { %v650_v3 = vsel %vm622_vm3, %v1341_v2, 0.0  ;;  %v664_v4 = vpack.c.bf16 %v1341_v2, %v1341_v2 }
 0x3ce   : > { %651 = vadd.xlane.f32.xlu1 %v650_v3 }
 0x3cf   : > { %1176 = vmatmul.mubr.msk.bf16.vlgmr.msra.gmra.mrb[12].mxu1 %vm622_vm3, %v664_v4 }
 0x3d0   : > { %1187 = vmatprep.mubr.msk.bf16.mxu1 %vm1574_vm0, %v1573_v0 }
 0x3d2   : > { %648 = vadd.xlane.f32.xlu1 %v647_v5 }
 0x3d4   : > { %v1343_v10 = vpop.eup %1342 }
 0x3d5   : > { %v666_v13 = vpack.c.bf16 %v1343_v10, %v1343_v10  ;;  %v656_v17 = vsel %vm622_vm3, %v1343_v10, 0.0 }
 0x3f2   : > { %v631_v8 = vpop.xlane.xlu0 %630 }
 0x3f3   : > { %v637_v9 = vsub.f32 %v570_v39, %v631_v8 }
 0x3f5   : > { %v643_v11 = vmul.f32 1.442695, %v637_v9 }
 0x3f6   : > { %v806_v12 = vpop.permute.xlu0 %805 }
 0x3f7   : > { %1344 = vpow2.f32 %v643_v11  ;;  %1186 = vmatpush3.bf16.msra.mxu1 %v806_v12 }
 0x3fa   : > { %1188 = vmatmul.mubr.msk.bf16.vlgmr.msra.gmra.mrb[16].mxu1 %vm622_vm3, %v666_v13 }
 0x401   : > { %v1345_v14 = vpop.eup %1344 }
 0x402   : > { %v653_v15 = vsel %vm622_vm3, %v1345_v14, 0.0  ;;  %v665_v16 = vpack.c.bf16 %v1345_v14, %v1345_v14 }
 0x403   : > { %654 = vadd.xlane.f32.xlu0 %v653_v15 }
 0x404   : > { %1182 = vmatmul.mubr.msk.bf16.vlgmr.msra.gmra.mrb[16].mxu0 %vm622_vm3, %v665_v16 }
 0x405   : > { %1195 = vmatprep.mubr.msk.bf16.mxu0 %vm1574_vm0, %v1573_v0  ;;  %1192 = vmatpush3.bf16.msra.mxu0 %v1336_v22 }
 0x406   : > { %1193 = vmatprep.subr.bf16.mxu0 %v1573_v0 }
 0x407   : > { %657 = vadd.xlane.f32.xlu0 %v656_v17 }
 0x409   : > { %1194 = vmatpush3.bf16.msra.mxu0 %v1337_v36 }
 0x45b   : > { %v652_v18 = vpop.xlane.xlu1 %651 }
 0x45c   : > { %1346 = vrcp.f32 %v652_v18 }
 0x45f   : > { %v649_v47 = vpop.xlane.xlu1 %648 }
 0x466   : > { %v1347_v24 = vpop.eup %1346 }
 0x490   : > { %v655_v31 = vpop.xlane.xlu0 %654 }
 0x491   : > { %1348 = vrcp.f32 %v655_v31 }
 0x494   : > { %v658_v32 = vpop.xlane.xlu0 %657 }
 0x495   : > { %1350 = vrcp.f32 %v658_v32 }
 0x496   : > { %1352 = vrcp.f32 %v649_v47 }
 0x498   : > { %v707_v19 = vpop.f32.mrb[12].mxu0 }
 0x499   : > { %v1171_v20 = vpop.f32.mrb[13].mxu0 }
 0x49a   : > { %v710_v21 = vpop.f32.mrb[14].mxu0 }
 0x49b   : > { %v1172_v23 = vpop.f32.mrb[15].mxu0  ;;  %v1349_v0 = vpop.eup %1348 }
 0x49f   : > { %v1351_v41 = vpop.eup %1350 }
 0x4a0   : > { %v1353_v48 = vpop.eup %1352 }
 0x4a1   : > { %v851_v49 = vmul.f32 %v1353_v48, %v707_v19 }
 0x4a2   : > { %v753_v25 = vpop.f32.mrb[12].mxu1 }
 0x4a3   : > { %v852_v26 = vmul.f32 %v1347_v24, %v753_v25  ;;  %v1177_v27 = vpop.f32.mrb[13].mxu1  ;;  %v855_v52 = vpack.c.bf16 %v851_v49, %v851_v49 }
 0x4a4   : > { %v756_v28 = vpop.f32.mrb[14].mxu1 }
 0x4a5   : > { %v856_v29 = vpack.c.bf16 %v852_v26, %v852_v26  ;;  %v1178_v30 = vpop.f32.mrb[15].mxu1 }
 0x4a7   : > { %860 = vrot.lane.b32.xlu0 %v856_v29, %s1579_s18  ;;  %s1582_s18 = smov [#allocation8]  }
 0x4cd   : > { %v845_v33 = vpop.f32.mrb[16].mxu1 }
 0x4ce   : > { %v1189_v34 = vpop.f32.mrb[17].mxu1  ;;  %v854_v43 = vmul.f32 %v1351_v41, %v845_v33 }
 0x4cf   : > { %v848_v35 = vpop.f32.mrb[18].mxu1 }
 0x4d0   : > { %v1190_v37 = vpop.f32.mrb[19].mxu1  ;;  %v858_v46 = vpack.c.bf16 %v854_v43, %v854_v43 }
 0x4d7   : > { %v799_v38 = vpop.f32.mrb[16].mxu0 }
 0x4d8   : > { %v853_v39 = vmul.f32 %v1349_v0, %v799_v38  ;;  %v1183_v40 = vpop.f32.mrb[17].mxu0 }
 0x4d9   : > { %v802_v42 = vpop.f32.mrb[18].mxu0 }
 0x4da   : > { %v857_v44 = vpack.c.bf16 %v853_v39, %v853_v39  ;;  %v1184_v45 = vpop.f32.mrb[19].mxu0 }
 0x4dc   : > { %863 = vrot.lane.b32.xlu1 %v857_v44, %s1580_s7  ;;  %s1444_s7 = sshll.u32 %s1582_s18, 4  ;;  %s1445_s7 = int_to_ptr.vmem [resolvable:$false] %s1444_s7 }
 0x4dd   : > { %p1447_p9 = scmp.lt.s32.totalorder %s1938_s29, %s1445_s7 }
 0x4e0   : > { %866 = vrot.lane.b32.xlu1 %v858_v46, %s1581_s1  ;;  %s1446_s1 = scalar_lea.vmem %s1445_s7, 256 }
 0x4e1   : > { %p1448_p11 = scmp.lt.s32.totalorder %s1446_s1, %s1440_s25 }
 0x4e3   : > { %p1449_p0 = por %p1448_p11, %p1447_p9 }
 0x4e5   : > { %p1450_p5 = pnand %p1449_p0, %p1443_p13 }
 0x519   : > { %v861_v50 = vpop.permute.xlu0 %860 }
 0x51a   : > { %v870_v53 = vsel %vm437_vm2, %v855_v52, %v861_v50 }
 0x54e   : > { %v864_v51 = vpop.permute.xlu1 %863 }
 0x54f   : > { %v872_v54 = vsel %vm622_vm3, %v870_v53, %v864_v51 }
 0x552   : > { %v867_v55 = vpop.permute.xlu1 %866 }
 0x553   : > { %v875_v56 = vsel %vm873_vm4, %v872_v54, %v867_v55 }
 0x554   : > { %1196 = vmatmul.mubr.msk.bf16.vlgmr.msra.gmra.mrb[20].mxu0 %vm318_vm1, %v875_v56 }
 0x627   : > { %v935_v58 = vpop.f32.mrb[20].mxu0 }
 0x628   : > { %v936_v59 = vadd.f32 %v1092_v57, %v935_v58  ;;  %v1197_v60 = vpop.f32.mrb[21].mxu0 }
 0x629   : > { %v938_v61 = vpop.f32.mrb[22].mxu0 }
 0x62a   : > { %v1198_v62 = vpop.f32.mrb[23].mxu0  ;;  %941 = vst.msk [vmem:[%s285_s17] sm:$0xff] %vm318_vm1, %v936_v59 }
 0x62b   : > { %1453 = shalt.err (!%p1450_p5)
}
 0x62c   : > { %s1454_s9 = scalar_lea.hbm %s1936_s5, 128  ;;  %s1458_s15 = scalar_lea.hbm %s2044_s13, 512 }
 0x62d   : > { %p1455_p8 = scmp.ne.s32.totalorder %s1936_s5, %s1454_s9  ;;  %p1459_p6 = scmp.lt.u32.totalorder %s1936_s5, %s2044_s13 }
 0x62e   : > { %p1460_p10 = scmp.lt.u32.totalorder %s1458_s15, %s1454_s9  ;;  %p1462_p4 = scmp.lt.u32.totalorder %s1454_s9, %s1936_s5 }
 0x62f   : > { %p1456_p12 = pnand %p1455_p8, %p2045_p3 }
 0x630   : > { %p1461_p1 = por %p1460_p10, %p1459_p6 }
 0x631   : > { %p1457_p2 = pneg %p1456_p12 }
 0x632   : > { %p1463_p7 = por %p1462_p4, %p1461_p1 }
 0x634   : > { %p1464_p13 = pnand %p1463_p7, %p1457_p2 }
 0x636   : > { %1467 = shalt.err (!%p1464_p13)
}
 0x637   : > { %1209 = dma.vmem_to_hbm [thread:$0]  (%p2045_p3), %s1938_s29, 128, %s1936_s5, %s943_s24  }
 0x638 PF: > { %s2046_s6 = sld [smem:[#allocation12_spill]]  ;;  %s2047_s17 = sld [smem:[#allocation15_spill]] }
 0x639   : > { %p1231_p9 = scmp.ge.s32.totalorder %s1566_s28, 2 }
 0x63e   : > { %s970_s30 = sand.u32 1, %s2046_s6   ;;  %p2048_p11 = scmp.ne.s32.totalorder %s2047_s17, 0 }
 0x63f   : > { %s971_s16 = scalar_lea.sflag [#allocation4], %s970_s30 }
 0x640   : > { %p1223_p0 = pnand %p1231_p9, %p2048_p11 }
 0x642   : > { %1521 = dma.done.wait (!%p1223_p0), %s971_s16, 128  }
 0x643   : > { %1523 = vsyncadd (!%p1223_p0), %s971_s16, 4294967168  ;;  %s22_s28 = sadd.s32 1, %s1566_s28   ;;  %s2049_s11 = smov %s1789_s21 }
 0x644   : > { %p19_p5 = scmp.ge.s32.totalorder %s22_s28, 6   ;;  %s2050_s24 = sld [smem:[#allocation13_spill]] }
 0x645   : > { %s2051_s26 = sld [smem:[#allocation16_spill]]  ;;  %s2052_s18 = smov %s1530_s19 }
 0x646   : > { %s2053_s19 = smov %s1534_s20  ;;  %s2054_s20 = smov %s1794_s3 }
 0x647   : > { %s2055_s21 = smov %s1542_s22  ;;  %s2056_s22 = smov %s1546_s23 }
 0x648   : > { %s2057_s23 = smov %s2049_s11  ;;  %s2058_s25 = smov %s1562_s27 }
 0x649   : > { %s2059_s27 = smov %s2065_s14  ;;  %21 = sbr.rel (!%p19_p5) target bundleno = 14 (0xe), region = 94 }
 0x650   :  { %976 = vsyncpa [#allocation3], 1 }
 0x651   :  { %978 = vsyncpa [#allocation3 + $0x1], 1 }
 0x652   :  { %979 = vsyncpa [#allocation6], 1 }
 0x653   :  { %980 = vsyncpa [#allocation4], 1 }
 0x654   :  { %982 = vsyncpa [#allocation4 + $0x1], 1 }

// kernel: tpu_custom_call.1
= control target key start
LH: loop header
LB: loop body
LE: loop exit
PB: predicated region body
PF: predicated region fallthrough
CT: control target
= control target key end

     0   :  { %s1999_s0 = inlined_call_operand.hbm [shape: bf16[2,16,32], index: 0, kind: input, shape index: {}]   ;;  %s2000_s1 = inlined_call_operand.hbm [shape: bf16[32,96], index: 1, kind: input, shape index: {}]   ;;  %s2001_s2 = inlined_call_operand.vmem [shape: f32[1,96], index: 2, kind: input, shape index: {}]   ;;  %s2002_s3 = inlined_call_operand.hbm [shape: bf16[32,32], index: 3, kind: input, shape index: {}]   ;;  %s2003_s4 = inlined_call_operand.vmem [shape: f32[1,32], index: 4, kind: input, shape index: {}]   ;;  %s2004_s5 = inlined_call_operand.hbm [shape: f32[2,16,32], index: 5, kind: output, shape index: {}]  }
   0x1   :  { %2019 = sst [smem:[#allocation17_spill]] %s2000_s1 }
   0x2   :  { %2020 = sst [smem:[#allocation18_spill]] %s2002_s3 }
   0x3   :  { %2021 = sst [smem:[#allocation19_spill]] %s2004_s5 }
   0x4   :  { %10 = vsyncpa [#allocation3], 0 }
   0x5   :  { %12 = vsyncpa [#allocation3 + $0x1], 0 }
   0x6   :  { %13 = vsyncpa [#allocation6], 0 }
   0x7   :  { %14 = vsyncpa [#allocation4], 0 }
   0x8   :  { %16 = vsyncpa [#allocation4 + $0x1], 0  ;;  %s1613_s18 = smov 0   ;;  %s1615_s19 = smov 0  }
   0x9   :  { %s1617_s20 = smov 0   ;;  %s1619_s21 = smov 0  }
   0xa   :  { %s1621_s22 = smov 0   ;;  %s1623_s23 = smov 0  }
   0xb   :  { %s1625_s24 = smov 0   ;;  %s1627_s25 = smov 0  }
   0xc   :  { %s1629_s26 = smov 0   ;;  %s1631_s27 = smov 0  }
   0xd   :  { %s1633_s28 = smov 0  }
   0xe LB: > { %2022 = sst [smem:[#allocation12_spill]] %s1526_s18  ;;  %s1062_s29 = sadd.s32 4294967295, %s1566_s28   ;;  %s1566_s28 = sphi %s1633_s28, %s22_s28   ;;  %s1562_s27 = sphi %s1631_s27, %s2059_s27   ;;  %s1558_s26 = sphi %s1629_s26, %s2051_s26   ;;  %s1554_s25 = sphi %s1627_s25, %s2058_s25   ;;  %s1550_s24 = sphi %s1625_s24, %s2050_s24   ;;  %s1546_s23 = sphi %s1623_s23, %s2057_s23   ;;  %s1542_s22 = sphi %s1621_s22, %s2056_s22   ;;  %s1538_s21 = sphi %s1619_s21, %s2055_s21   ;;  %s1534_s20 = sphi %s1617_s20, %s2054_s20   ;;  %s1530_s19 = sphi %s1615_s19, %s2053_s19   ;;  %s1526_s18 = sphi %s1613_s18, %s2052_s18  }
   0xf   : > { %2023 = sst [smem:[#allocation13_spill]] %s1558_s26  ;;  %s1063_s30 = sadd.s32 4294967294, %s1566_s28  }
  0x10   : > { %p54_p0 = scmp.ne.s32.totalorder %s1542_s22, %s1538_s21  ;;  %p1669_p1 = scmp.eq.s32.totalorder %s1062_s29, 0 }
  0x11   : > { %p163_p2 = scmp.ne.s32.totalorder %s1534_s20, %s1530_s19  ;;  %p164_p4 = scmp.eq.s32.totalorder %s1062_s29, 3 }
  0x12   : > { %s2024_s6 = scalar_select %p1669_p1, 1, 0 }
  0x13   : > { %p1678_p3 = por %p1669_p1, %p54_p0  ;;  %p169_p5 = scmp.ne.s32.totalorder %s1530_s19, %s1526_s18 }
  0x14   : > { %p170_p6 = scmp.eq.s32.totalorder %s1063_s30, 3  ;;  %p1684_p7 = por %p164_p4, %p163_p2 }
  0x15   : > { %s2025_s8 = scalar_select %p1678_p3, 1, 0 }
  0x16   : > { %s2026_s9 = scalar_select %p1684_p7, 1, 0 }
  0x17   : > { %p1064_p8 = scmp.ge.s32.totalorder %s1566_s28, 1  ;;  %p1689_p9 = por %p170_p6, %p169_p5 }
  0x18   : > { %2027 = sst [smem:[#allocation14_spill]] %s2026_s9  ;;  %p177_p10 = scmp.lt.s32.totalorder %s1566_s28, 5 }
  0x19   : > { %s2028_s10 = scalar_select %p1689_p9, 1, 0 }
  0x1a   : > { %p1694_p11 = pnand %p1064_p8, %p177_p10  ;;  %s1568_s12 = smov [#allocation5]  }
  0x1b   : > { %2029 = sst [smem:[#allocation15_spill]] %s2028_s10  ;;  %s189_s13 = sshll.u32 %s1568_s12, 4  ;;  %s190_s13 = int_to_ptr.vmem [resolvable:$true] %s189_s13 }
  0x1c   : > { %s2030_s11 = scalar_select %p1694_p11, 1, 0 }
  0x1d   : > { %p1211_p12 = pneg %p1694_p11  ;;  %s1569_s15 = smov [#allocation7]  }
  0x1e   : > { %s205_s16 = sshll.u32 %s1569_s15, 4  ;;  %s2032_s1 = sld [smem:[#allocation17_spill]]  ;;  %s1706_s16 = int_to_ptr.vmem [resolvable:$true] %s205_s16 }
  0x1f   : > { %p1702_p13 = pnand %p1211_p12, %p1669_p1 }
  0x21   : > { %p1356_p2 = pneg %p1702_p13 }
  0x24   : > { %s1354_s29 = scalar_lea.hbm %s2032_s1, 256 }
  0x25   : > { %p1355_p0 = scmp.ne.s32.totalorder %s2032_s1, %s1354_s29  ;;  %p1361_p6 = scmp.lt.u32.totalorder %s1354_s29, %s2032_s1 }
  0x27   : > { %p1357_p4 = pnand %p1356_p2, %p1355_p0 }
  0x29   : > { %p1358_p5 = pneg %p1357_p4 }
  0x2b   : > { %p1363_p8 = pnand %p1361_p6, %p1358_p5 }
  0x2d   : > { %1366 = shalt.err (!%p1363_p8)
}
  0x2e   : > { %s1367_s15 = scalar_lea.vmem %s190_s13, 256  ;;  %p1375_p7 = scmp.lt.s32.totalorder %s190_s13, %s190_s13 }
  0x2f   : > { %p1368_p10 = scmp.ne.s32.totalorder %s190_s13, %s1367_s15  ;;  %p1376_p1 = scmp.lt.s32.totalorder %s1367_s15, %s1367_s15 }
  0x31   : > { %p1370_p12 = pnand %p1368_p10, %p1356_p2  ;;  %p1377_p3 = por %p1376_p1, %p1375_p7 }
  0x33   : > { %p1371_p9 = pneg %p1370_p12 }
  0x35   : > { %p1378_p11 = pnand %p1377_p3, %p1371_p9 }
  0x37   : > { %1381 = shalt.err (!%p1378_p11)
}
  0x38   : > { %s2015_s17 = smov 64   ;;  %s2016_s21 = smov 4  }
  0x39   : > { %1214 = dma.hbm_to_vmem [thread:$0]  (!%p1702_p13), %s2032_s1, 256, %s190_s13, [#allocation6], %s2015_s17, %s2015_s17, %s2016_s21  }
  0x3a   : > { %s2033_s3 = sld [smem:[#allocation18_spill]] }
  0x40   : > { %s1382_s12 = scalar_lea.hbm %s2033_s3, 256 }
  0x41   : > { %p1383_p1 = scmp.ne.s32.totalorder %s2033_s3, %s1382_s12  ;;  %p1389_p9 = scmp.lt.u32.totalorder %s1382_s12, %s2033_s3 }
  0x43   : > { %p1385_p3 = pnand %p1383_p1, %p1356_p2 }
  0x45   : > { %p1386_p7 = pneg %p1385_p3 }
  0x47   : > { %p1391_p11 = pnand %p1389_p9, %p1386_p7 }
  0x49   : > { %1394 = shalt.err (!%p1391_p11)
}
  0x4a   : > { %s1395_s13 = scalar_lea.vmem %s1706_s16, 256  ;;  %p1403_p6 = scmp.lt.s32.totalorder %s1706_s16, %s1706_s16 }
  0x4b   : > { %p1396_p0 = scmp.ne.s32.totalorder %s1706_s16, %s1395_s13  ;;  %p1404_p8 = scmp.lt.s32.totalorder %s1395_s13, %s1395_s13 }
  0x4d   : > { %p1398_p4 = pnand %p1396_p0, %p1356_p2  ;;  %p1405_p10 = por %p1404_p8, %p1403_p6 }
  0x4f   : > { %p1399_p5 = pneg %p1398_p4 }
  0x51   : > { %p1406_p12 = pnand %p1405_p10, %p1399_p5 }
  0x53   : > { %1409 = shalt.err (!%p1406_p12)
}
  0x54   : > { %1217 = dma.hbm_to_vmem [thread:$0]  (!%p1702_p13), %s2033_s3, 256, %s1706_s16, [#allocation6], %s2015_s17, %s2015_s17, %s2016_s21  }
  0x55   : > { %s31_s9 = sadd.s32 1, %s1558_s26  ;;  %s34_s14 = sadd.s32 1, %s1562_s27 }
  0x56   : > { %p32_p2 = scmp.ge.s32.totalorder %s31_s9, 2  ;;  %s41_s7 = sadd.s32 1, %s1546_s23 }
  0x57   : > { %p48_p1 = scmp.ne.s32.totalorder %s1546_s23, %s1542_s22  ;;  %p49_p3 = scmp.eq.s32.totalorder %s1566_s28, 0 }
  0x58   : > { %s2061_s9 = smov (%p32_p2, %s31_s9), 0  ;;  %s2063_s14 = smov (!%p32_p2, %s34_s14), %s1562_s27 }
  0x59   : > { %2034 = sst [smem:[#allocation16_spill]] %s2061_s9  ;;  %p1770_p7 = por %p49_p3, %p48_p1 }
  0x5a   : > { %s149_s29 = ssub.s32 %s1558_s26, %s2061_s9  ;;  %p36_p13 = scmp.ge.s32.totalorder %s2063_s14, 2 }
  0x5b   : > { %p1228_p9 = scmp.lt.s32.totalorder %s1566_s28, 4  ;;  %s222_s16 = sand.u32 1, %s1546_s23  }
  0x5c   : > { %s1101_s30 = sshll.u32 %s1562_s27, 7  ;;  %s2065_s14 = smov (%p36_p13, %s2063_s14), 0 }
  0x5d   : > { %s1068_s12 = sshll.u32 %s222_s16, 3  ;;  %s38_s15 = ssub.s32 %s1562_s27, %s2065_s14 }
  0x5e   : > { %p39_p11 = scmp.eq.s32.totalorder %s38_s15, 0  ;;  %s150_s13 = sor.u32 %s149_s29, %s38_s15 }
  0x5f   : > { %p151_p0 = scmp.eq.s32.totalorder %s150_s13, 0  ;;  %s1786_s17 = scalar_lea.hbm %s1999_s0, %s1101_s30 }
  0x60   : > { %s1789_s21 = scalar_select %p39_p11, %s1546_s23, %s41_s7  }
  0x61   : > { %s2036_s1 = sadd.s32 1, %s1534_s20  ;;  %s226_s9 = scalar_lea.vmem [#allocation2], %s1068_s12 }
  0x62   : > { %s1794_s3 = scalar_select %p151_p0, %s1534_s20, %s2036_s1  }
  0x63   : > { %s233_s26 = sshll.u32 %s226_s9, 4  ;;  %p1800_p4 = pnand %p1228_p9, %p1770_p7  ;;  %s1804_s26 = int_to_ptr.vmem [resolvable:$true] %s233_s26 }
  0x64   : > { %s1806_s30 = scalar_lea.sflag [#allocation3], %s222_s16  ;;  %s1410_s7 = scalar_lea.hbm %s1786_s17, 128 }
  0x65   : > { %p1411_p5 = scmp.ne.s32.totalorder %s1786_s17, %s1410_s7  ;;  %p1412_p6 = pneg %p1800_p4 }
  0x66   : > { %s1415_s10 = scalar_lea.hbm %s1999_s0, 256  ;;  %p1416_p12 = scmp.lt.u32.totalorder %s1786_s17, %s1999_s0 }
  0x67   : > { %p1413_p8 = pnand %p1412_p6, %p1411_p5  ;;  %p1417_p2 = scmp.lt.u32.totalorder %s1415_s10, %s1410_s7 }
  0x68   : > { %p1419_p3 = scmp.lt.u32.totalorder %s1410_s7, %s1786_s17 }
  0x69   : > { %p1414_p10 = pneg %p1413_p8  ;;  %p1418_p1 = por %p1417_p2, %p1416_p12 }
  0x6b   : > { %p1420_p7 = por %p1419_p3, %p1418_p1 }
  0x6d   : > { %p1421_p13 = pnand %p1420_p7, %p1414_p10 }
  0x6f   : > { %1424 = shalt.err (!%p1421_p13)
}
  0x70   : > { %s1425_s16 = scalar_lea.vmem %s1804_s26, 128  ;;  %s1572_s13 = smov [#allocation2]  }
  0x71   : > { %p1426_p9 = scmp.ne.s32.totalorder %s1804_s26, %s1425_s16  ;;  %s1430_s5 = sshll.u32 %s1572_s13, 4  ;;  %s1431_s5 = int_to_ptr.vmem [resolvable:$false] %s1430_s5 }
  0x72   : > { %s1432_s18 = scalar_lea.vmem %s1431_s5, 256  ;;  %p1433_p5 = scmp.lt.s32.totalorder %s1804_s26, %s1431_s5 }
  0x73   : > { %p1428_p11 = pnand %p1426_p9, %p1412_p6  ;;  %p1434_p8 = scmp.lt.s32.totalorder %s1432_s18, %s1425_s16 }
  0x75   : > { %p1429_p0 = pneg %p1428_p11  ;;  %p1435_p12 = por %p1434_p8, %p1433_p5 }
  0x77   : > { %p1436_p2 = pnand %p1435_p12, %p1429_p0 }
  0x79   : > { %1439 = shalt.err (!%p1436_p2)
}
  0x7a   : > { %s2038_s7 = smov 4   ;;  %s2039_s1 = smov 64  }
  0x7b   : > { %1221 = dma.hbm_to_vmem [thread:$0]  (!%p1800_p4), %s1786_s17, 128, %s1804_s26, %s1806_s30, %s2039_s1, %s2039_s1, %s2038_s7  }
  0x7c   : > { %p2040_p6 = scmp.ne.s32.totalorder %s2030_s11, 0 }
  0x7d   : > { %s247_s9 = sand.u32 (!%p2040_p6), 1, %s1542_s22   ;;  %p2041_p10 = scmp.ne.s32.totalorder (!%p2040_p6), %s2025_s8, 0 }
  0x7e   : > { %245 = sbr.rel (%p2040_p6) target bundleno = 1592 (0x638), region = 40  ;;  %s1840_s10 = sshll.u32 (!%p2040_p6), %s247_s9, 3 }
  0x7f   : > { %s248_s12 = scalar_lea.sflag (!%p2040_p6), [#allocation3], %s247_s9  ;;  %s251_s15 = scalar_lea.vmem (!%p2040_p6), [#allocation2], %s1840_s10 }
  0x85   : > { %1513 = dma.done.wait (%p2041_p10), %s248_s12, 128  }
  0x86   : > { %1515 = vsyncadd (%p2041_p10), %s248_s12, 4294967168  ;;  %p2042_p1 = scmp.ne.s32.totalorder %s2024_s6, 0 }
  0x88   : > { %1517 = dma.done.wait (%p2042_p1), [#allocation6], 512  }
  0x89   : > { %1519 = vsyncadd (%p2042_p1), [#allocation6], 4294966784  ;;  %v1573_v0 = vmov 0.0   ;;  %vm1574_vm0 = vmmov 0   ;;  %s1076_s26 = sshll.u32 %s1550_s24, 3  ;;  %v1333_v1 = vld [vmem:[#allocation5] sm:$0xff]  }
  0x8a   : > { %1135 = vmatprep.subr.bf16.mxu1 %v1573_v0  ;;  %1127 = vmatprep.subr.bf16.mxu0 %v1573_v0  ;;  %s288_s8 = sshra.s32 %s1076_s26, 3  ;;  %s1575_s6 = smov 96   ;;  %v1334_v2 = vld [vmem:[#allocation5 + $0x8] sm:$0xff]   ;;  %v1078_v3 = vld [vmem:[%s2001_s2] ss:$0 sm:$0xff]  ;;  %vm318_vm1 = vcmask 261120  }
  0x8b   : > { %1139 = vmatprep.mubr.msk.bf16.mxu1 %vm1574_vm0, %v1573_v0  ;;  %1131 = vmatprep.mubr.msk.bf16.mxu0 %vm1574_vm0, %v1573_v0  ;;  %s1077_s11 = sshll.u32 %s288_s8, 2  ;;  %v1335_v7 = vld [vmem:[%s251_s15] sm:$0xff]   ;;  %vm437_vm2 = vcmask 64512   ;;  %s1576_s16 = smov 112   ;;  %vm622_vm3 = vcmask 130048   ;;  %vm873_vm4 = vcmask 195584  }
  0x8c   : > { %368 = vrot.lane.b32.xlu0 %v1333_v1, %s1575_s6  ;;  %1128 = vmatpush3.bf16.msra.mxu0 %v1333_v1  ;;  %s291_s17 = scalar_lea.vmem %s251_s15, %s1077_s11 [#allocation2]  ;;  %s1577_s13 = smov 120  }
  0x8d   : > { %1129 = vmatprep.subr.bf16.mxu0 %v1573_v0  ;;  %374 = vrot.lane.b32.xlu1 %v1078_v3, %s1575_s6  ;;  %v292_v4 = vld [vmem:[%s291_s17] sm:$0xf]  ;;  %s1578_s5 = smov 104   ;;  %s1579_s18 = smov 8  }
  0x8e   : > { %s1580_s7 = smov 16   ;;  %s1581_s1 = smov 24  }
  0x8f   : > { %s283_s9 = sand.u32 1, %s1530_s19   ;;  %s1097_s12 = sshll.u32 %s1554_s25, 1 }
  0x90   : > { %370 = vrot.lane.b32.xlu0 %v1334_v2, %s1575_s6  ;;  %1130 = vmatpush3.bf16.msra.mxu0 %v1334_v2  ;;  %s1075_s10 = sshll.u32 %s283_s9, 3  ;;  %s954_s15 = sadd.s32 %s1550_s24, %s1097_s12 }
  0x91   : > { %1143 = vmatprep.subr.bf16.mxu0 %v1573_v0  ;;  %s2043_s11 = sld [smem:[#allocation14_spill]]  ;;  %s285_s17 = scalar_lea.vmem [#allocation8], %s1075_s10 }
  0x92   : > { %s958_s29 = sshll.u32 %s285_s17, 4  ;;  %s943_s24 = scalar_lea.sflag [#allocation4], %s283_s9  ;;  %s1938_s29 = int_to_ptr.vmem [resolvable:$true] %s958_s29 }
  0x93   : > { %1132 = vmatmul.mubr.msk.bf16.vlgmr.msra.gmra.mrb[0].mxu0 %vm318_vm1, %v292_v4  ;;  %s1440_s25 = scalar_lea.vmem %s1938_s29, 128 }
  0x94   : > { %1145 = vmatprep.mubr.msk.bf16.mxu0 %vm1574_vm0, %v1573_v0  ;;  %p1441_p4 = scmp.ne.s32.totalorder %s1938_s29, %s1440_s25 }
  0x97   : > { %p2045_p3 = scmp.ne.s32.totalorder %s2043_s11, 0 }
  0x99   : > { %p1442_p7 = pnand %p1441_p4, %p2045_p3 }
  0x9b   : > { %p1443_p13 = pneg %p1442_p7 }
  0xfe   : > { %v369_v5 = vpop.permute.xlu0 %368 }
  0xff   : > { %1136 = vmatpush3.bf16.msra.mxu1 %v369_v5  ;;  %v375_v13 = vpop.permute.xlu1 %374 }
 0x100   : > { %1137 = vmatprep.subr.bf16.mxu1 %v1573_v0 }
 0x102   : > { %v371_v6 = vpop.permute.xlu0 %370 }
 0x103   : > { %1138 = vmatpush3.bf16.msra.mxu1 %v371_v6 }
 0x104   : > { %1149 = vmatprep.subr.bf16.mxu1 %v1573_v0 }
 0x106   : > { %1140 = vmatmul.mubr.msk.bf16.vlgmr.msra.gmra.mrb[0].mxu1 %vm318_vm1, %v1335_v7 }
 0x107   : > { %1151 = vmatprep.mubr.msk.bf16.mxu1 %vm1574_vm0, %v1573_v0 }
 0x166   : > { %v356_v8 = vpop.f32.mrb[0].mxu0 }
 0x167   : > { %v1133_v9 = vpop.f32.mrb[1].mxu0  ;;  %v357_v12 = vadd.f32 %v1078_v3, %v356_v8 }
 0x168   : > { %v359_v10 = vpop.f32.mrb[2].mxu0 }
 0x169   : > { %v1134_v11 = vpop.f32.mrb[3].mxu0  ;;  %v362_v20 = vmul.f32 0.35355338, %v357_v12 }
 0x16b   : > { %v421_v22 = vpack.c.bf16 %v362_v20, %v362_v20 }
 0x1d9   : > { %v414_v14 = vpop.f32.mrb[0].mxu1 }
 0x1da   : > { %v1141_v15 = vpop.f32.mrb[1].mxu1  ;;  %v415_v17 = vadd.f32 %v414_v14, %v375_v13 }
 0x1db   : > { %v417_v16 = vpop.f32.mrb[2].mxu1 }
 0x1dc   : > { %v418_v18 = vadd.f32 %v417_v16, %v375_v13  ;;  %v1142_v19 = vpop.f32.mrb[3].mxu1 }
 0x1de   : > { %v429_v21 = vpack.c.bf16 %v418_v18, %v415_v17 }
 0x1e0   : > { %433 = vrot.lane.b32.xlu0 %v429_v21, %s1576_s16  ;;  %431 = vrot.lane.b32.xlu1 %v429_v21, %s1577_s13  ;;  %v442_v23 = vsel %vm437_vm2, %v429_v21, 0 }
 0x1e1   : > { %1144 = vmatpush3.bf16.xpose.msra.mxu0 %v442_v23 }
 0x1e2   : > { %1155 = vmatprep.subr.bf16.mxu0 %v1573_v0 }
 0x1e4   : > { %435 = vrot.lane.b32.xlu0 %v429_v21, %s1578_s5  ;;  %423 = vrot.lane.b32.xlu1 %v421_v22, %s1577_s13  ;;  %s2044_s13 = sld [smem:[#allocation19_spill]] }
 0x1e8   : > { %425 = vrot.lane.b32.xlu1 %v421_v22, %s1576_s16  ;;  %1146 = vmatmul.mubr.msk.bf16.vlgmr.msra.gmra.mrb[4].mxu0 %vm437_vm2, %v421_v22 }
 0x1e9   : > { %427 = vrot.lane.b32.xlu0 %v421_v22, %s1578_s5  ;;  %1157 = vmatprep.mubr.msk.bf16.mxu0 %vm1574_vm0, %v1573_v0  ;;  %v1336_v22 = vld [vmem:[#allocation7] sm:$0xff]  }
 0x252   : > { %v434_v24 = vpop.permute.xlu0 %433  ;;  %v432_v25 = vpop.permute.xlu1 %431 }
 0x253   : > { %v534_v26 = vsel %vm437_vm2, %v434_v24, 0  ;;  %v488_v27 = vsel %vm437_vm2, %v432_v25, 0 }
 0x254   : > { %1150 = vmatpush3.bf16.xpose.msra.mxu1 %v488_v27  ;;  %1156 = vmatpush3.bf16.xpose.msra.mxu0 %v534_v26 }
 0x255   : > { %1161 = vmatprep.subr.bf16.mxu1 %v1573_v0  ;;  %1167 = vmatprep.subr.bf16.mxu0 %v1573_v0 }
 0x256   : > { %v424_v28 = vpop.permute.xlu1 %423  ;;  %v436_v29 = vpop.permute.xlu0 %435 }
 0x257   : > { %v580_v31 = vsel %vm437_vm2, %v436_v29, 0 }
 0x25a   : > { %v426_v30 = vpop.permute.xlu1 %425 }
 0x25b   : > { %1152 = vmatmul.mubr.msk.bf16.vlgmr.msra.gmra.mrb[4].mxu1 %vm437_vm2, %v424_v28  ;;  %1158 = vmatmul.mubr.msk.bf16.vlgmr.msra.gmra.mrb[8].mxu0 %vm437_vm2, %v426_v30  ;;  %v428_v32 = vpop.permute.xlu0 %427 }
 0x25c   : > { %1162 = vmatpush3.bf16.xpose.msra.mxu1 %v580_v31  ;;  %1163 = vmatprep.mubr.msk.bf16.mxu1 %vm1574_vm0, %v1573_v0 }
 0x25d   : > { %1173 = vmatprep.subr.bf16.mxu1 %v1573_v0  ;;  %1169 = vmatprep.mubr.msk.bf16.mxu0 %vm1574_vm0, %v1573_v0 }
 0x263   : > { %1164 = vmatmul.mubr.msk.bf16.vlgmr.msra.gmra.mrb[8].mxu1 %vm437_vm2, %v428_v32 }
 0x264   : > { %1175 = vmatprep.mubr.msk.bf16.mxu1 %vm1574_vm0, %v1573_v0 }
 0x2bb   : > { %v478_v33 = vpop.f32.mrb[4].mxu0 }
 0x2bc   : > { %v1147_v34 = vpop.f32.mrb[5].mxu0  ;;  %v623_v35 = vsel %vm622_vm3, %v478_v33, -inf }
 0x2bd   : > { %624 = vmax.xlane.f32.xlu1 %v623_v35  ;;  %v481_v36 = vpop.f32.mrb[6].mxu0 }
 0x2be   : > { %v1148_v37 = vpop.f32.mrb[7].mxu0  ;;  %v1337_v36 = vld [vmem:[#allocation7 + $0x8] sm:$0xff]  }
 0x2ce   : > { %713 = vrot.lane.b32.xlu1 %v432_v25, %s1575_s6 }
 0x32e   : > { %v524_v38 = vpop.f32.mrb[4].mxu1  ;;  %v570_v39 = vpop.f32.mrb[8].mxu0 }
 0x32f   : > { %v1153_v40 = vpop.f32.mrb[5].mxu1  ;;  %v1159_v41 = vpop.f32.mrb[9].mxu0  ;;  %v626_v42 = vsel %vm622_vm3, %v524_v38, -inf  ;;  %v629_v55 = vsel %vm622_vm3, %v570_v39, -inf }
 0x330   : > { %627 = vmax.xlane.f32.xlu0 %v626_v42  ;;  %v527_v43 = vpop.f32.mrb[6].mxu1  ;;  %v573_v44 = vpop.f32.mrb[10].mxu0 }
 0x331   : > { %v1154_v45 = vpop.f32.mrb[7].mxu1  ;;  %v1160_v46 = vpop.f32.mrb[11].mxu0 }
 0x336   : > { %v616_v47 = vpop.f32.mrb[8].mxu1 }
 0x337   : > { %v1165_v48 = vpop.f32.mrb[9].mxu1  ;;  %v632_v49 = vsel %vm622_vm3, %v616_v47, -inf }
 0x338   : > { %v619_v50 = vpop.f32.mrb[10].mxu1  ;;  %633 = vmax.xlane.f32.xlu1 %v632_v49 }
 0x339   : > { %v1166_v51 = vpop.f32.mrb[11].mxu1 }
 0x346   : > { %667 = vrot.lane.b32.xlu0 %v429_v21, %s1575_s6 }
 0x349   : > { %759 = vrot.lane.b32.xlu1 %v434_v24, %s1575_s6 }
 0x34a   : > { %v625_v52 = vpop.xlane.xlu1 %624 }
 0x34b   : > { %v635_v53 = vsub.f32 %v478_v33, %v625_v52 }
 0x34d   : > { %v639_v56 = vmul.f32 1.442695, %v635_v53 }
 0x34e   : > { %v714_v54 = vpop.permute.xlu1 %713 }
 0x34f   : > { %1174 = vmatpush3.bf16.msra.mxu1 %v714_v54  ;;  %1338 = vpow2.f32 %v639_v56 }
 0x350   : > { %1185 = vmatprep.subr.bf16.mxu1 %v1573_v0 }
 0x359   : > { %v1339_v59 = vpop.eup %1338 }
 0x35a   : > { %v663_v62 = vpack.c.bf16 %v1339_v59, %v1339_v59  ;;  %v647_v5 = vsel %vm622_vm3, %v1339_v59, 0.0 }
 0x365   : > { %630 = vmax.xlane.f32.xlu0 %v629_v55 }
 0x37b   : > { %805 = vrot.lane.b32.xlu0 %v436_v29, %s1575_s6  ;;  %s1098_s6 = sshll.u32 %s954_s15, 7 }
 0x37c   : > { %s1936_s5 = scalar_lea.hbm %s2044_s13, %s1098_s6 }
 0x3bd   : > { %v628_v57 = vpop.xlane.xlu0 %627 }
 0x3be   : > { %v636_v58 = vsub.f32 %v524_v38, %v628_v57  ;;  %v1092_v57 = vld [vmem:[%s2003_s4] ss:$0 sm:$0xff] }
 0x3c0   : > { %v641_v60 = vmul.f32 1.442695, %v636_v58 }
 0x3c1   : > { %v668_v61 = vpop.permute.xlu0 %667 }
 0x3c2   : > { %1340 = vpow2.f32 %v641_v60  ;;  %1168 = vmatpush3.bf16.msra.mxu0 %v668_v61 }
 0x3c3   : > { %1179 = vmatprep.subr.bf16.mxu0 %v1573_v0 }
 0x3c5   : > { %1170 = vmatmul.mubr.msk.bf16.vlgmr.msra.gmra.mrb[12].mxu0 %vm622_vm3, %v663_v62  ;;  %v634_v63 = vpop.xlane.xlu1 %633 }
 0x3c6   : > { %1181 = vmatprep.mubr.msk.bf16.mxu0 %vm1574_vm0, %v1573_v0  ;;  %v638_v6 = vsub.f32 %v616_v47, %v634_v63 }
 0x3c8   : > { %v645_v7 = vmul.f32 1.442695, %v638_v6 }
 0x3c9   : > { %v760_v1 = vpop.permute.xlu1 %759 }
 0x3ca   : > { %1180 = vmatpush3.bf16.msra.mxu0 %v760_v1  ;;  %1342 = vpow2.f32 %v645_v7 }
 0x3cb   : > { %1191 = vmatprep.subr.bf16.mxu0 %v1573_v0 }
 0x3cc   : > { %v1341_v2 = vpop.eup %1340 }
 0x3cd   : > { %v650_v3 = vsel %vm622_vm3, %v1341_v2, 0.0  ;;  %v664_v4 = vpack.c.bf16 %v1341_v2, %v1341_v2 }
 0x3ce   : > { %651 = vadd.xlane.f32.xlu1 %v650_v3 }
 0x3cf   : > { %1176 = vmatmul.mubr.msk.bf16.vlgmr.msra.gmra.mrb[12].mxu1 %vm622_vm3, %v664_v4 }
 0x3d0   : > { %1187 = vmatprep.mubr.msk.bf16.mxu1 %vm1574_vm0, %v1573_v0 }
 0x3d2   : > { %648 = vadd.xlane.f32.xlu1 %v647_v5 }
 0x3d4   : > { %v1343_v10 = vpop.eup %1342 }
 0x3d5   : > { %v666_v13 = vpack.c.bf16 %v1343_v10, %v1343_v10  ;;  %v656_v17 = vsel %vm622_vm3, %v1343_v10, 0.0 }
 0x3f2   : > { %v631_v8 = vpop.xlane.xlu0 %630 }
 0x3f3   : > { %v637_v9 = vsub.f32 %v570_v39, %v631_v8 }
 0x3f5   : > { %v643_v11 = vmul.f32 1.442695, %v637_v9 }
 0x3f6   : > { %v806_v12 = vpop.permute.xlu0 %805 }
 0x3f7   : > { %1344 = vpow2.f32 %v643_v11  ;;  %1186 = vmatpush3.bf16.msra.mxu1 %v806_v12 }
 0x3fa   : > { %1188 = vmatmul.mubr.msk.bf16.vlgmr.msra.gmra.mrb[16].mxu1 %vm622_vm3, %v666_v13 }
 0x401   : > { %v1345_v14 = vpop.eup %1344 }
 0x402   : > { %v653_v15 = vsel %vm622_vm3, %v1345_v14, 0.0  ;;  %v665_v16 = vpack.c.bf16 %v1345_v14, %v1345_v14 }
 0x403   : > { %654 = vadd.xlane.f32.xlu0 %v653_v15 }
 0x404   : > { %1182 = vmatmul.mubr.msk.bf16.vlgmr.msra.gmra.mrb[16].mxu0 %vm622_vm3, %v665_v16 }
 0x405   : > { %1195 = vmatprep.mubr.msk.bf16.mxu0 %vm1574_vm0, %v1573_v0  ;;  %1192 = vmatpush3.bf16.msra.mxu0 %v1336_v22 }
 0x406   : > { %1193 = vmatprep.subr.bf16.mxu0 %v1573_v0 }
 0x407   : > { %657 = vadd.xlane.f32.xlu0 %v656_v17 }
 0x409   : > { %1194 = vmatpush3.bf16.msra.mxu0 %v1337_v36 }
 0x45b   : > { %v652_v18 = vpop.xlane.xlu1 %651 }
 0x45c   : > { %1346 = vrcp.f32 %v652_v18 }
 0x45f   : > { %v649_v47 = vpop.xlane.xlu1 %648 }
 0x466   : > { %v1347_v24 = vpop.eup %1346 }
 0x490   : > { %v655_v31 = vpop.xlane.xlu0 %654 }
 0x491   : > { %1348 = vrcp.f32 %v655_v31 }
 0x494   : > { %v658_v32 = vpop.xlane.xlu0 %657 }
 0x495   : > { %1350 = vrcp.f32 %v658_v32 }
 0x496   : > { %1352 = vrcp.f32 %v649_v47 }
 0x498   : > { %v707_v19 = vpop.f32.mrb[12].mxu0 }
 0x499   : > { %v1171_v20 = vpop.f32.mrb[13].mxu0 }
 0x49a   : > { %v710_v21 = vpop.f32.mrb[14].mxu0 }
 0x49b   : > { %v1172_v23 = vpop.f32.mrb[15].mxu0  ;;  %v1349_v0 = vpop.eup %1348 }
 0x49f   : > { %v1351_v41 = vpop.eup %1350 }
 0x4a0   : > { %v1353_v48 = vpop.eup %1352 }
 0x4a1   : > { %v851_v49 = vmul.f32 %v1353_v48, %v707_v19 }
 0x4a2   : > { %v753_v25 = vpop.f32.mrb[12].mxu1 }
 0x4a3   : > { %v852_v26 = vmul.f32 %v1347_v24, %v753_v25  ;;  %v1177_v27 = vpop.f32.mrb[13].mxu1  ;;  %v855_v52 = vpack.c.bf16 %v851_v49, %v851_v49 }
 0x4a4   : > { %v756_v28 = vpop.f32.mrb[14].mxu1 }
 0x4a5   : > { %v856_v29 = vpack.c.bf16 %v852_v26, %v852_v26  ;;  %v1178_v30 = vpop.f32.mrb[15].mxu1 }
 0x4a7   : > { %860 = vrot.lane.b32.xlu0 %v856_v29, %s1579_s18  ;;  %s1582_s18 = smov [#allocation8]  }
 0x4cd   : > { %v845_v33 = vpop.f32.mrb[16].mxu1 }
 0x4ce   : > { %v1189_v34 = vpop.f32.mrb[17].mxu1  ;;  %v854_v43 = vmul.f32 %v1351_v41, %v845_v33 }
 0x4cf   : > { %v848_v35 = vpop.f32.mrb[18].mxu1 }
 0x4d0   : > { %v1190_v37 = vpop.f32.mrb[19].mxu1  ;;  %v858_v46 = vpack.c.bf16 %v854_v43, %v854_v43 }
 0x4d7   : > { %v799_v38 = vpop.f32.mrb[16].mxu0 }
 0x4d8   : > { %v853_v39 = vmul.f32 %v1349_v0, %v799_v38  ;;  %v1183_v40 = vpop.f32.mrb[17].mxu0 }
 0x4d9   : > { %v802_v42 = vpop.f32.mrb[18].mxu0 }
 0x4da   : > { %v857_v44 = vpack.c.bf16 %v853_v39, %v853_v39  ;;  %v1184_v45 = vpop.f32.mrb[19].mxu0 }
 0x4dc   : > { %863 = vrot.lane.b32.xlu1 %v857_v44, %s1580_s7  ;;  %s1444_s7 = sshll.u32 %s1582_s18, 4  ;;  %s1445_s7 = int_to_ptr.vmem [resolvable:$false] %s1444_s7 }
 0x4dd   : > { %p1447_p9 = scmp.lt.s32.totalorder %s1938_s29, %s1445_s7 }
 0x4e0   : > { %866 = vrot.lane.b32.xlu1 %v858_v46, %s1581_s1  ;;  %s1446_s1 = scalar_lea.vmem %s1445_s7, 256 }
 0x4e1   : > { %p1448_p11 = scmp.lt.s32.totalorder %s1446_s1, %s1440_s25 }
 0x4e3   : > { %p1449_p0 = por %p1448_p11, %p1447_p9 }
 0x4e5   : > { %p1450_p5 = pnand %p1449_p0, %p1443_p13 }
 0x519   : > { %v861_v50 = vpop.permute.xlu0 %860 }
 0x51a   : > { %v870_v53 = vsel %vm437_vm2, %v855_v52, %v861_v50 }
 0x54e   : > { %v864_v51 = vpop.permute.xlu1 %863 }
 0x54f   : > { %v872_v54 = vsel %vm622_vm3, %v870_v53, %v864_v51 }
 0x552   : > { %v867_v55 = vpop.permute.xlu1 %866 }
 0x553   : > { %v875_v56 = vsel %vm873_vm4, %v872_v54, %v867_v55 }
 0x554   : > { %1196 = vmatmul.mubr.msk.bf16.vlgmr.msra.gmra.mrb[20].mxu0 %vm318_vm1, %v875_v56 }
 0x627   : > { %v935_v58 = vpop.f32.mrb[20].mxu0 }
 0x628   : > { %v936_v59 = vadd.f32 %v1092_v57, %v935_v58  ;;  %v1197_v60 = vpop.f32.mrb[21].mxu0 }
 0x629   : > { %v938_v61 = vpop.f32.mrb[22].mxu0 }
 0x62a   : > { %v1198_v62 = vpop.f32.mrb[23].mxu0  ;;  %941 = vst.msk [vmem:[%s285_s17] sm:$0xff] %vm318_vm1, %v936_v59 }
 0x62b   : > { %1453 = shalt.err (!%p1450_p5)
}
 0x62c   : > { %s1454_s9 = scalar_lea.hbm %s1936_s5, 128  ;;  %s1458_s15 = scalar_lea.hbm %s2044_s13, 512 }
 0x62d   : > { %p1455_p8 = scmp.ne.s32.totalorder %s1936_s5, %s1454_s9  ;;  %p1459_p6 = scmp.lt.u32.totalorder %s1936_s5, %s2044_s13 }
 0x62e   : > { %p1460_p10 = scmp.lt.u32.totalorder %s1458_s15, %s1454_s9  ;;  %p1462_p4 = scmp.lt.u32.totalorder %s1454_s9, %s1936_s5 }
 0x62f   : > { %p1456_p12 = pnand %p1455_p8, %p2045_p3 }
 0x630   : > { %p1461_p1 = por %p1460_p10, %p1459_p6 }
 0x631   : > { %p1457_p2 = pneg %p1456_p12 }
 0x632   : > { %p1463_p7 = por %p1462_p4, %p1461_p1 }
 0x634   : > { %p1464_p13 = pnand %p1463_p7, %p1457_p2 }
 0x636   : > { %1467 = shalt.err (!%p1464_p13)
}
 0x637   : > { %1209 = dma.vmem_to_hbm [thread:$0]  (%p2045_p3), %s1938_s29, 128, %s1936_s5, %s943_s24  }
 0x638 PF: > { %s2046_s6 = sld [smem:[#allocation12_spill]]  ;;  %s2047_s17 = sld [smem:[#allocation15_spill]] }
 0x639   : > { %p1231_p9 = scmp.ge.s32.totalorder %s1566_s28, 2 }
 0x63e   : > { %s970_s30 = sand.u32 1, %s2046_s6   ;;  %p2048_p11 = scmp.ne.s32.totalorder %s2047_s17, 0 }
 0x63f   : > { %s971_s16 = scalar_lea.sflag [#allocation4], %s970_s30 }
 0x640   : > { %p1223_p0 = pnand %p1231_p9, %p2048_p11 }
 0x642   : > { %1521 = dma.done.wait (!%p1223_p0), %s971_s16, 128  }
 0x643   : > { %1523 = vsyncadd (!%p1223_p0), %s971_s16, 4294967168  ;;  %s22_s28 = sadd.s32 1, %s1566_s28   ;;  %s2049_s11 = smov %s1789_s21 }
 0x644   : > { %p19_p5 = scmp.ge.s32.totalorder %s22_s28, 6   ;;  %s2050_s24 = sld [smem:[#allocation13_spill]] }
 0x645   : > { %s2051_s26 = sld [smem:[#allocation16_spill]]  ;;  %s2052_s18 = smov %s1530_s19 }
 0x646   : > { %s2053_s19 = smov %s1534_s20  ;;  %s2054_s20 = smov %s1794_s3 }
 0x647   : > { %s2055_s21 = smov %s1542_s22  ;;  %s2056_s22 = smov %s1546_s23 }
 0x648   : > { %s2057_s23 = smov %s2049_s11  ;;  %s2058_s25 = smov %s1562_s27 }
 0x649   : > { %s2059_s27 = smov %s2065_s14  ;;  %21 = sbr.rel (!%p19_p5) target bundleno = 14 (0xe), region = 94 }
 0x650   :  { %976 = vsyncpa [#allocation3], 1 }
 0x651   :  { %978 = vsyncpa [#allocation3 + $0x1], 1 }
 0x652   :  { %979 = vsyncpa [#allocation6], 1 }
 0x653   :  { %980 = vsyncpa [#allocation4], 1 }
 0x654   :  { %982 = vsyncpa [#allocation4 + $0x1], 1 }

</bundles_post_ra>
